<compile_context>
chip_gen: v7x
topology: tpu7x:2x2x1
jax: 0.10.0
libtpu: 0.0.40
codegen_flags: <defaults>
</compile_context>

<pallas_src>
import jax
import jax.numpy as jnp
from jax.experimental import pallas as pl
from jax.experimental.pallas import tpu as pltpu


# ---------------------------------------------------------------------------
# Kernel
# ---------------------------------------------------------------------------
def _make_lstm_kernel(num_layers: int, hidden_size: int, block_t: int,
                      matmul_dtype):
    H, Tt, L = hidden_size, block_t, num_layers
    lane_aligned = (H % 128 == 0)   # gate slices / per-step out stores are free

    def kernel(x_ref, *rest):
        # rest = [Wih_0, Whh_0, b_0, ..., Wih_{L-1}, Whh_{L-1}, b_{L-1},
        #         out_ref, h_sc, c_sc, gproj_sc, (io_sc if L > 1)]
        w_refs = rest[:3 * L]
        out_ref = rest[3 * L]
        scratch = rest[3 * L + 1:]
        h_sc, c_sc, gproj_sc = scratch[0], scratch[1], scratch[2]
        io_sc = scratch[3] if L > 1 else None

        Bb = x_ref.shape[0]     # batch rows in this tile (static)
        D_in0 = x_ref.shape[2]  # input feature size (static)

        # Reset recurrent state at the start of every sequence (time block 0).
        @pl.when(pl.program_id(1) == 0)
        def _init():
            h_sc[...] = jnp.zeros_like(h_sc)
            c_sc[...] = jnp.zeros_like(c_sc)

        # Few layers -> static unrolled loop (all indices stay static).
        for layer in range(L):
            wih = w_refs[3 * layer][...]      # (D_in, 4H) matmul_dtype, i/f/o cols pre-scaled by 0.5
            whh = w_refs[3 * layer + 1][...]  # (H,    4H) matmul_dtype, same folding
            b = w_refs[3 * layer + 2][...]    # (1,    4H) f32, (b_ih + b_hh) with same folding

            # ---- hoisted input projection: ONE MXU matmul for all Tt steps ----
            if layer == 0:
                inp2d = x_ref[...].reshape(Bb * Tt, D_in0)
            else:
                inp2d = io_sc[...].reshape(Bb * Tt, H)
            gproj = jnp.dot(inp2d.astype(matmul_dtype), wih,
                            preferred_element_type=jnp.float32) + b
            gproj_sc[...] = gproj.reshape(Bb, Tt, 4 * H)

            last_layer = (layer == L - 1)

            # ---- sequential recurrence: only h_{t-1} @ W_hh per step ----------
            # h/c live in vregs across the unrolled loop; scratch touched once.
            h = h_sc[layer]   # (Bb, H) f32
            c = c_sc[layer]   # (Bb, H) f32
            out_pieces = []
            for t in range(Tt):  # Tt <= 32 and static -> fully unrolled
                gates = gproj_sc[:, t, :] + jnp.dot(
                    h.astype(matmul_dtype), whh,
                    preferred_element_type=jnp.float32)          # (Bb, 4H) f32

                # All four gates through ONE tanh over the full gate slab:
                #   sigmoid(x) = 0.5*(tanh(x/2)+1); the /2 is folded into the
                #   i/f/o weight columns, g uses plain tanh.
                tg = jnp.tanh(gates)
                # NOTE: for H % 128 != 0 (e.g. the H=32 test) these are
                # sub-vreg lane slices; choose H as a multiple of 128 at
                # production sizes to keep them relayout-free.
                i_g = 0.5 * (tg[:, 0 * H:1 * H] + 1.0)
                f_g = 0.5 * (tg[:, 1 * H:2 * H] + 1.0)
                g_g = tg[:, 2 * H:3 * H]
                o_g = 0.5 * (tg[:, 3 * H:4 * H] + 1.0)

                c = f_g * c + i_g * g_g
                h = o_g * jnp.tanh(c)

                if last_layer:
                    if lane_aligned:
                        out_ref[:, t * H:(t + 1) * H] = h   # dense, lane-aligned
                    else:
                        out_pieces.append(h)                # staged, stored once below
                else:
                    io_sc[:, t, :] = h                      # feeds next layer's projection

            h_sc[layer] = h
            c_sc[layer] = c
            if last_layer and not lane_aligned:
                # One lane-dense (Bb, Tt*H) block store per grid step.
                out_ref[...] = jnp.concatenate(out_pieces, axis=-1)

    return kernel


# ---------------------------------------------------------------------------
# Wrapper helpers
# ---------------------------------------------------------------------------
def _pick_block_t(T: int, H: int, cap: int = 32) -> int:
    """Timesteps per grid step: multiple of 8 (or the full T), with
    block_t*H a multiple of 128 so the flattened output block is lane-dense."""
    if T <= cap:
        return T
    c = (cap // 8) * 8
    while c >= 8:
        if T % c == 0 and (c * H) % 128 == 0:
            return c
        c -= 8
    return T  # full-extent block is always legal


def _prepare_kernel_params(params, matmul_dtype):
    """PyTorch-layout params -> kernel params.

    Input per layer: (W_ih (4H,D_in), W_hh (4H,H), b_ih (4H,), b_hh (4H,)),
    gate order (i, f, g, o).  We pre-transpose, fold the two biases, and fold
    the 0.5 pre-scale of the i/f/o columns (for the tanh-based sigmoid) into
    the weights and bias.  Weights are cast to matmul_dtype; bias stays f32.
    """
    prepped = []
    for (w_ih, w_hh, b_ih, b_hh) in params:
        H = w_hh.shape[1]
        scale = jnp.concatenate([
            jnp.full((H,), 0.5, jnp.float32),   # i
            jnp.full((H,), 0.5, jnp.float32),   # f
            jnp.ones((H,), jnp.float32),        # g (plain tanh)
            jnp.full((H,), 0.5, jnp.float32),   # o
        ])
        wih_t = (w_ih.T * scale[None, :]).astype(matmul_dtype)    # (D_in, 4H)
        whh_t = (w_hh.T * scale[None, :]).astype(matmul_dtype)    # (H, 4H)
        b = ((b_ih + b_hh) * scale)[None, :].astype(jnp.float32)  # (1, 4H)
        prepped.append((wih_t, whh_t, b))
    return prepped


def _vmem_limit_bytes(Bb, Tt, D, H, L, matmul_dtype):
    """Raise the scoped VMEM limit only when the estimate needs it."""
    mb = jnp.dtype(matmul_dtype).itemsize
    d_ins = [D] + [H] * (L - 1)
    weights = sum((di * 4 * H + H * 4 * H) * mb + 4 * H * 4 for di in d_ins) * 2
    io_blocks = (Bb * Tt * D * 4 + Bb * Tt * H * 4) * 2   # double-buffered x / out
    scratch = 2 * L * Bb * H * 4 + Bb * Tt * 4 * H * 4 + Bb * Tt * H * 4
    need = weights + io_blocks + scratch
    if need <= (16 << 20):
        return None   # conservative default scoped limit already suffices
    # TODO(synk): v7x has only 64 MiB physical VMEM; stream per-layer weights
    # and/or shrink block_t there instead of just raising the limit.
    return int(min(need * 3 // 2 + (4 << 20), 96 << 20))


# ---------------------------------------------------------------------------
# Forward pass
# ---------------------------------------------------------------------------
def lstm_sequence_model_forward(x, params, *, block_t=None, block_b=None,
                                matmul_dtype=jnp.bfloat16):
    """x: (B, T, input_size) f32.  params: PyTorch-layout per-layer tuples
    (W_ih (4H,D_in), W_hh (4H,H), b_ih (4H,), b_hh (4H,)).

    Returns (B, T, H) f32, matching nn.LSTM(batch_first=True) output[0]
    (exactly for matmul_dtype=float32, to bf16 accuracy otherwise).
    """
    B, T, D = x.shape
    L = len(params)
    H = params[0][1].shape[1]
    kparams = _prepare_kernel_params(params, matmul_dtype)

    if block_t is None:
        block_t = _pick_block_t(T, H, cap=32)
    if block_b is None:
        # TODO(synk): on v7x pick block_b = B // 2 (multiple of 8) so the
        # parallel batch axis has >= 2 tiles and both TensorCores are used.
        block_b = B
    assert T % block_t == 0 and (
        block_t == T or (block_t % 8 == 0 and (block_t * H) % 128 == 0))
    assert B % block_b == 0 and (block_b == B or block_b % 8 == 0)

    grid = (B // block_b, T // block_t)

    in_specs = [pl.BlockSpec((block_b, block_t, D), lambda bb, tb: (bb, tb, 0))]
    args = [x]
    for (wih_t, whh_t, b) in kparams:
        # Constant index maps: weights fetched once and stay VMEM-resident.
        # TODO(synk): single-buffer these (pl.Buffered(1)) to halve their VMEM
        # footprint at large H.
        in_specs.append(pl.BlockSpec(wih_t.shape, lambda bb, tb: (0, 0)))
        in_specs.append(pl.BlockSpec(whh_t.shape, lambda bb, tb: (0, 0)))
        in_specs.append(pl.BlockSpec(b.shape, lambda bb, tb: (0, 0)))
        args.extend([wih_t, whh_t, b])

    scratch_shapes = [
        pltpu.VMEM((L, block_b, H), jnp.float32),           # h per layer
        pltpu.VMEM((L, block_b, H), jnp.float32),           # c per layer
        pltpu.VMEM((block_b, block_t, 4 * H), jnp.float32),  # hoisted gate pre-acts
    ]
    if L > 1:
        scratch_shapes.append(
            pltpu.VMEM((block_b, block_t, H), jnp.float32))  # layer l -> l+1 acts

    out_flat = pl.pallas_call(
        _make_lstm_kernel(L, H, block_t, matmul_dtype),
        out_shape=jax.ShapeDtypeStruct((B, T * H), jnp.float32),
        grid=grid,
        in_specs=in_specs,
        # Lane-dense output layout: last block dim = block_t * H (>= 128).
        out_specs=pl.BlockSpec((block_b, block_t * H), lambda bb, tb: (bb, tb)),
        scratch_shapes=scratch_shapes,
        compiler_params=pltpu.CompilerParams(
            # batch tiles independent (megacore / v7x dual TC);
            # time blocks carry the recurrence -> sequential.
            dimension_semantics=("parallel", "arbitrary"),
            vmem_limit_bytes=_vmem_limit_bytes(block_b, block_t, D, H, L,
                                               matmul_dtype),
        ),
    )(*args)
    return out_flat.reshape(B, T, H)   # free row-major reshape


# ---------------------------------------------------------------------------
# Params init + pure-JAX reference (PyTorch nn.LSTM semantics)
# ---------------------------------------------------------------------------
def init_lstm_params(key, input_size, hidden_size, num_layers):
    """PyTorch nn.LSTM parameter shapes: W_ih_l (4H,D_in), W_hh_l (4H,H),
    b_ih_l, b_hh_l (4H,), gate order (i, f, g, o)."""
    bound = 1.0 / jnp.sqrt(jnp.float32(hidden_size))
    params = []
    for layer in range(num_layers):
        d_in = input_size if layer == 0 else hidden_size
        key, k1, k2, k3, k4 = jax.random.split(key, 5)
        w_ih = jax.random.uniform(k1, (4 * hidden_size, d_in), jnp.float32, -bound, bound)
        w_hh = jax.random.uniform(k2, (4 * hidden_size, hidden_size), jnp.float32, -bound, bound)
        b_ih = jax.random.uniform(k3, (4 * hidden_size,), jnp.float32, -bound, bound)
        b_hh = jax.random.uniform(k4, (4 * hidden_size,), jnp.float32, -bound, bound)
        params.append((w_ih, w_hh, b_ih, b_hh))
    return params


def lstm_reference(x, params):
    """Pure-JAX f32 reference with the standard sigmoid/tanh formulation."""
    B, T, _ = x.shape
    layer_in = x
    for (w_ih, w_hh, b_ih, b_hh) in params:
        H = w_hh.shape[1]
        h = jnp.zeros((B, H), jnp.float32)
        c = jnp.zeros((B, H), jnp.float32)
        outs = []
        for t in range(T):
            gates = layer_in[:, t, :] @ w_ih.T + h @ w_hh.T + b_ih + b_hh
            i_g = jax.nn.sigmoid(gates[:, 0 * H:1 * H])
            f_g = jax.nn.sigmoid(gates[:, 1 * H:2 * H])
            g_g = jnp.tanh(gates[:, 2 * H:3 * H])
            o_g = jax.nn.sigmoid(gates[:, 3 * H:4 * H])
            c = f_g * c + i_g * g_g
            h = o_g * jnp.tanh(c)
            outs.append(h)
        layer_in = jnp.stack(outs, axis=1)
    return layer_in


if __name__ == "__main__":
    batch_size, seq_len, input_size, hidden_size, num_layers = 2, 8, 16, 32, 2

    key = jax.random.PRNGKey(0)
    k_x, k_p = jax.random.split(key)
    x = jax.random.normal(k_x, (batch_size, seq_len, input_size), jnp.float32)
    params = init_lstm_params(k_p, input_size, hidden_size, num_layers)

    ref = jax.block_until_ready(lstm_reference(x, params))

    # Exact-math path (f32 MXU operands) -> tight check against nn.LSTM math.
    out_f32 = jax.block_until_ready(
        lstm_sequence_model_forward(x, params, matmul_dtype=jnp.float32))
    assert out_f32.shape == (batch_size, seq_len, hidden_size)
    assert jnp.allclose(out_f32, ref, atol=1e-4, rtol=1e-4), \
        "Pallas LSTM (f32) mismatch vs reference"

    # Default bf16-MXU path (production config) -> loose check.
    out_bf16 = jax.block_until_ready(lstm_sequence_model_forward(x, params))
    assert out_bf16.shape == (batch_size, seq_len, hidden_size)
    assert bool(jnp.all(jnp.isfinite(out_bf16)))
    assert float(jnp.max(jnp.abs(out_bf16 - ref))) < 0.1, \
        "Pallas LSTM (bf16) drifted too far from reference"

    print("KERNEL_OK")
</pallas_src>

<mosaic_0001>
module attributes {stable_mosaic.version = 11 : i64} {
  func.func @kernel(%arg0: i32, %arg1: i32, %arg2: memref<2x8x16xf32, #tpu.memory_space<vmem>>, %arg3: memref<16x128xf32, #tpu.memory_space<vmem>>, %arg4: memref<32x128xf32, #tpu.memory_space<vmem>>, %arg5: memref<1x128xf32, #tpu.memory_space<vmem>>, %arg6: memref<32x128xf32, #tpu.memory_space<vmem>>, %arg7: memref<32x128xf32, #tpu.memory_space<vmem>>, %arg8: memref<1x128xf32, #tpu.memory_space<vmem>>, %arg9: memref<2x256xf32, #tpu.memory_space<vmem>>, %arg10: memref<2x2x32xf32, #tpu.memory_space<vmem>>, %arg11: memref<2x2x32xf32, #tpu.memory_space<vmem>>, %arg12: memref<2x8x128xf32, #tpu.memory_space<vmem>>, %arg13: memref<2x8x32xf32, #tpu.memory_space<vmem>>) attributes {dimension_semantics = [#tpu.dimension_semantics<parallel>, #tpu.dimension_semantics<arbitrary>], iteration_bounds = array<i64: 1, 1>, scalar_prefetch = 0 : i64, scratch_operands = 4 : i64, tpu.core_type = #tpu.core_type<tc>, window_params = [{transform_indices = @transform_0, window_bounds = array<i64: 2, 8, 16>}, {pipeline_mode = #tpu.pipeline_mode<synchronous>, transform_indices = @transform_1, window_bounds = array<i64: 16, 128>}, {pipeline_mode = #tpu.pipeline_mode<synchronous>, transform_indices = @transform_2, window_bounds = array<i64: 32, 128>}, {pipeline_mode = #tpu.pipeline_mode<synchronous>, transform_indices = @transform_3, window_bounds = array<i64: 1, 128>}, {pipeline_mode = #tpu.pipeline_mode<synchronous>, transform_indices = @transform_4, window_bounds = array<i64: 32, 128>}, {pipeline_mode = #tpu.pipeline_mode<synchronous>, transform_indices = @transform_5, window_bounds = array<i64: 32, 128>}, {pipeline_mode = #tpu.pipeline_mode<synchronous>, transform_indices = @transform_6, window_bounds = array<i64: 1, 128>}, {transform_indices = @transform_7, window_bounds = array<i64: 2, 256>}]} {
    %c0_i32 = arith.constant 0 : i32
    %0 = arith.cmpi eq, %arg1, %c0_i32 : i32
    %1 = arith.extui %0 : i1 to i32
    %c0_i32_0 = arith.constant 0 : i32
    %2 = arith.cmpi ne, %1, %c0_i32_0 : i32
    scf.if %2 {
      %cst_228 = arith.constant 0.000000e+00 : f32
      %485 = vector.broadcast %cst_228 : f32 to vector<2x2x32xf32>
      %c0_229 = arith.constant 0 : index
      %c0_230 = arith.constant 0 : index
      %c0_231 = arith.constant 0 : index
      %486 = vector.load %arg10[%c0_229, %c0_230, %c0_231] : memref<2x2x32xf32, #tpu.memory_space<vmem>>, vector<2x2x32xf32>
      tpu.vector_store %arg10[%c0_229, %c0_230, %c0_231], %485 {strides = array<i32>} : memref<2x2x32xf32, #tpu.memory_space<vmem>>, vector<2x2x32xf32>,
      %cst_232 = arith.constant 0.000000e+00 : f32
      %487 = vector.broadcast %cst_232 : f32 to vector<2x2x32xf32>
      %c0_233 = arith.constant 0 : index
      %c0_234 = arith.constant 0 : index
      %c0_235 = arith.constant 0 : index
      %488 = vector.load %arg11[%c0_233, %c0_234, %c0_235] : memref<2x2x32xf32, #tpu.memory_space<vmem>>, vector<2x2x32xf32>
      tpu.vector_store %arg11[%c0_233, %c0_234, %c0_235], %487 {strides = array<i32>} : memref<2x2x32xf32, #tpu.memory_space<vmem>>, vector<2x2x32xf32>,
    } else {
    }
    %c0 = arith.constant 0 : index
    %c0_1 = arith.constant 0 : index
    %3 = vector.load %arg3[%c0, %c0_1] : memref<16x128xf32, #tpu.memory_space<vmem>>, vector<16x128xf32>
    %c0_2 = arith.constant 0 : index
    %c0_3 = arith.constant 0 : index
    %4 = vector.load %arg4[%c0_2, %c0_3] : memref<32x128xf32, #tpu.memory_space<vmem>>, vector<32x128xf32>
    %c0_4 = arith.constant 0 : index
    %c0_5 = arith.constant 0 : index
    %5 = vector.load %arg5[%c0_4, %c0_5] : memref<1x128xf32, #tpu.memory_space<vmem>>, vector<1x128xf32>
    %c0_6 = arith.constant 0 : index
    %c0_7 = arith.constant 0 : index
    %c0_8 = arith.constant 0 : index
    %6 = vector.load %arg2[%c0_6, %c0_7, %c0_8] : memref<2x8x16xf32, #tpu.memory_space<vmem>>, vector<2x8x16xf32>
    %7 = vector.shape_cast %6 : vector<2x8x16xf32> to vector<16x16xf32>
    %cst = arith.constant dense<0.000000e+00> : vector<16x128xf32>
    %8 = tpu.matmul %7, %3, %cst {dimension_numbers = #tpu.dot_dimension_numbers<[1], [0], [0], [1], [0, 0, 1, 1], [], []>} : vector<16x16xf32>, vector<16x128xf32>, vector<16x128xf32> -> vector<16x128xf32>
    %9 = vector.broadcast %5 : vector<1x128xf32> to vector<16x128xf32>
    %10 = arith.addf %8, %9 : vector<16x128xf32>
    %11 = vector.shape_cast %10 : vector<16x128xf32> to vector<2x8x128xf32>
    %c0_9 = arith.constant 0 : index
    %c0_10 = arith.constant 0 : index
    %c0_11 = arith.constant 0 : index
    %12 = vector.load %arg12[%c0_9, %c0_10, %c0_11] : memref<2x8x128xf32, #tpu.memory_space<vmem>>, vector<2x8x128xf32>
    tpu.vector_store %arg12[%c0_9, %c0_10, %c0_11], %11 {strides = array<i32>} : memref<2x8x128xf32, #tpu.memory_space<vmem>>, vector<2x8x128xf32>,
    %c0_12 = arith.constant 0 : index
    %c0_13 = arith.constant 0 : index
    %c0_14 = arith.constant 0 : index
    %13 = vector.load %arg10[%c0_12, %c0_13, %c0_14] : memref<2x2x32xf32, #tpu.memory_space<vmem>>, vector<1x2x32xf32>
    %14 = vector.shape_cast %13 : vector<1x2x32xf32> to vector<2x32xf32>
    %c0_15 = arith.constant 0 : index
    %c0_16 = arith.constant 0 : index
    %c0_17 = arith.constant 0 : index
    %15 = vector.load %arg11[%c0_15, %c0_16, %c0_17] : memref<2x2x32xf32, #tpu.memory_space<vmem>>, vector<1x2x32xf32>
    %16 = vector.shape_cast %15 : vector<1x2x32xf32> to vector<2x32xf32>
    %c0_18 = arith.constant 0 : index
    %c0_19 = arith.constant 0 : index
    %c0_20 = arith.constant 0 : index
    %17 = vector.load %arg12[%c0_18, %c0_19, %c0_20] : memref<2x8x128xf32, #tpu.memory_space<vmem>>, vector<2x1x128xf32>
    %18 = vector.shape_cast %17 : vector<2x1x128xf32> to vector<2x128xf32>
    %cst_21 = arith.constant dense<0.000000e+00> : vector<2x128xf32>
    %19 = tpu.matmul %14, %4, %cst_21 {dimension_numbers = #tpu.dot_dimension_numbers<[1], [0], [0], [1], [0, 0, 1, 1], [], []>} : vector<2x32xf32>, vector<32x128xf32>, vector<2x128xf32> -> vector<2x128xf32>
    %20 = arith.addf %18, %19 : vector<2x128xf32>
    %21 = math.tanh %20 : vector<2x128xf32>
    %22 = vector.extract_strided_slice %21 {offsets = [0, 0], sizes = [2, 32], strides = [1, 1]} : vector<2x128xf32> to vector<2x32xf32>
    %cst_22 = arith.constant 1.000000e+00 : f32
    %23 = vector.broadcast %cst_22 : f32 to vector<2x32xf32>
    %24 = arith.addf %22, %23 : vector<2x32xf32>
    %cst_23 = arith.constant 5.000000e-01 : f32
    %25 = vector.broadcast %cst_23 : f32 to vector<2x32xf32>
    %26 = arith.mulf %25, %24 : vector<2x32xf32>
    %27 = vector.extract_strided_slice %21 {offsets = [0, 32], sizes = [2, 32], strides = [1, 1]} : vector<2x128xf32> to vector<2x32xf32>
    %cst_24 = arith.constant 1.000000e+00 : f32
    %28 = vector.broadcast %cst_24 : f32 to vector<2x32xf32>
    %29 = arith.addf %27, %28 : vector<2x32xf32>
    %cst_25 = arith.constant 5.000000e-01 : f32
    %30 = vector.broadcast %cst_25 : f32 to vector<2x32xf32>
    %31 = arith.mulf %30, %29 : vector<2x32xf32>
    %32 = vector.extract_strided_slice %21 {offsets = [0, 64], sizes = [2, 32], strides = [1, 1]} : vector<2x128xf32> to vector<2x32xf32>
    %33 = vector.extract_strided_slice %21 {offsets = [0, 96], sizes = [2, 32], strides = [1, 1]} : vector<2x128xf32> to vector<2x32xf32>
    %cst_26 = arith.constant 1.000000e+00 : f32
    %34 = vector.broadcast %cst_26 : f32 to vector<2x32xf32>
    %35 = arith.addf %33, %34 : vector<2x32xf32>
    %cst_27 = arith.constant 5.000000e-01 : f32
    %36 = vector.broadcast %cst_27 : f32 to vector<2x32xf32>
    %37 = arith.mulf %36, %35 : vector<2x32xf32>
    %38 = arith.mulf %31, %16 : vector<2x32xf32>
    %39 = arith.mulf %26, %32 : vector<2x32xf32>
    %40 = arith.addf %38, %39 : vector<2x32xf32>
    %41 = math.tanh %40 : vector<2x32xf32>
    %42 = arith.mulf %37, %41 : vector<2x32xf32>
    %c0_28 = arith.constant 0 : index
    %c0_29 = arith.constant 0 : index
    %c0_30 = arith.constant 0 : index
    %43 = vector.load %arg13[%c0_28, %c0_29, %c0_30] : memref<2x8x32xf32, #tpu.memory_space<vmem>>, vector<2x1x32xf32>
    %44 = vector.shape_cast %43 : vector<2x1x32xf32> to vector<2x32xf32>
    %45 = vector.shape_cast %42 : vector<2x32xf32> to vector<2x1x32xf32>
    tpu.vector_store %arg13[%c0_28, %c0_29, %c0_30], %45 {strides = array<i32>} : memref<2x8x32xf32, #tpu.memory_space<vmem>>, vector<2x1x32xf32>,
    %c0_31 = arith.constant 0 : index
    %c1 = arith.constant 1 : index
    %c0_32 = arith.constant 0 : index
    %46 = vector.load %arg12[%c0_31, %c1, %c0_32] : memref<2x8x128xf32, #tpu.memory_space<vmem>>, vector<2x1x128xf32>
    %47 = vector.shape_cast %46 : vector<2x1x128xf32> to vector<2x128xf32>
    %cst_33 = arith.constant dense<0.000000e+00> : vector<2x128xf32>
    %48 = tpu.matmul %42, %4, %cst_33 {dimension_numbers = #tpu.dot_dimension_numbers<[1], [0], [0], [1], [0, 0, 1, 1], [], []>} : vector<2x32xf32>, vector<32x128xf32>, vector<2x128xf32> -> vector<2x128xf32>
    %49 = arith.addf %47, %48 : vector<2x128xf32>
    %50 = math.tanh %49 : vector<2x128xf32>
    %51 = vector.extract_strided_slice %50 {offsets = [0, 0], sizes = [2, 32], strides = [1, 1]} : vector<2x128xf32> to vector<2x32xf32>
    %cst_34 = arith.constant 1.000000e+00 : f32
    %52 = vector.broadcast %cst_34 : f32 to vector<2x32xf32>
    %53 = arith.addf %51, %52 : vector<2x32xf32>
    %cst_35 = arith.constant 5.000000e-01 : f32
    %54 = vector.broadcast %cst_35 : f32 to vector<2x32xf32>
    %55 = arith.mulf %54, %53 : vector<2x32xf32>
    %56 = vector.extract_strided_slice %50 {offsets = [0, 32], sizes = [2, 32], strides = [1, 1]} : vector<2x128xf32> to vector<2x32xf32>
    %cst_36 = arith.constant 1.000000e+00 : f32
    %57 = vector.broadcast %cst_36 : f32 to vector<2x32xf32>
    %58 = arith.addf %56, %57 : vector<2x32xf32>
    %cst_37 = arith.constant 5.000000e-01 : f32
    %59 = vector.broadcast %cst_37 : f32 to vector<2x32xf32>
    %60 = arith.mulf %59, %58 : vector<2x32xf32>
    %61 = vector.extract_strided_slice %50 {offsets = [0, 64], sizes = [2, 32], strides = [1, 1]} : vector<2x128xf32> to vector<2x32xf32>
    %62 = vector.extract_strided_slice %50 {offsets = [0, 96], sizes = [2, 32], strides = [1, 1]} : vector<2x128xf32> to vector<2x32xf32>
    %cst_38 = arith.constant 1.000000e+00 : f32
    %63 = vector.broadcast %cst_38 : f32 to vector<2x32xf32>
    %64 = arith.addf %62, %63 : vector<2x32xf32>
    %cst_39 = arith.constant 5.000000e-01 : f32
    %65 = vector.broadcast %cst_39 : f32 to vector<2x32xf32>
    %66 = arith.mulf %65, %64 : vector<2x32xf32>
    %67 = arith.mulf %60, %40 : vector<2x32xf32>
    %68 = arith.mulf %55, %61 : vector<2x32xf32>
    %69 = arith.addf %67, %68 : vector<2x32xf32>
    %70 = math.tanh %69 : vector<2x32xf32>
    %71 = arith.mulf %66, %70 : vector<2x32xf32>
    %c0_40 = arith.constant 0 : index
    %c1_41 = arith.constant 1 : index
    %c0_42 = arith.constant 0 : index
    %72 = vector.load %arg13[%c0_40, %c1_41, %c0_42] : memref<2x8x32xf32, #tpu.memory_space<vmem>>, vector<2x1x32xf32>
    %73 = vector.shape_cast %72 : vector<2x1x32xf32> to vector<2x32xf32>
    %74 = vector.shape_cast %71 : vector<2x32xf32> to vector<2x1x32xf32>
    tpu.vector_store %arg13[%c0_40, %c1_41, %c0_42], %74 {strides = array<i32>} : memref<2x8x32xf32, #tpu.memory_space<vmem>>, vector<2x1x32xf32>,
    %c0_43 = arith.constant 0 : index
    %c2 = arith.constant 2 : index
    %c0_44 = arith.constant 0 : index
    %75 = vector.load %arg12[%c0_43, %c2, %c0_44] : memref<2x8x128xf32, #tpu.memory_space<vmem>>, vector<2x1x128xf32>
    %76 = vector.shape_cast %75 : vector<2x1x128xf32> to vector<2x128xf32>
    %cst_45 = arith.constant dense<0.000000e+00> : vector<2x128xf32>
    %77 = tpu.matmul %71, %4, %cst_45 {dimension_numbers = #tpu.dot_dimension_numbers<[1], [0], [0], [1], [0, 0, 1, 1], [], []>} : vector<2x32xf32>, vector<32x128xf32>, vector<2x128xf32> -> vector<2x128xf32>
    %78 = arith.addf %76, %77 : vector<2x128xf32>
    %79 = math.tanh %78 : vector<2x128xf32>
    %80 = vector.extract_strided_slice %79 {offsets = [0, 0], sizes = [2, 32], strides = [1, 1]} : vector<2x128xf32> to vector<2x32xf32>
    %cst_46 = arith.constant 1.000000e+00 : f32
    %81 = vector.broadcast %cst_46 : f32 to vector<2x32xf32>
    %82 = arith.addf %80, %81 : vector<2x32xf32>
    %cst_47 = arith.constant 5.000000e-01 : f32
    %83 = vector.broadcast %cst_47 : f32 to vector<2x32xf32>
    %84 = arith.mulf %83, %82 : vector<2x32xf32>
    %85 = vector.extract_strided_slice %79 {offsets = [0, 32], sizes = [2, 32], strides = [1, 1]} : vector<2x128xf32> to vector<2x32xf32>
    %cst_48 = arith.constant 1.000000e+00 : f32
    %86 = vector.broadcast %cst_48 : f32 to vector<2x32xf32>
    %87 = arith.addf %85, %86 : vector<2x32xf32>
    %cst_49 = arith.constant 5.000000e-01 : f32
    %88 = vector.broadcast %cst_49 : f32 to vector<2x32xf32>
    %89 = arith.mulf %88, %87 : vector<2x32xf32>
    %90 = vector.extract_strided_slice %79 {offsets = [0, 64], sizes = [2, 32], strides = [1, 1]} : vector<2x128xf32> to vector<2x32xf32>
    %91 = vector.extract_strided_slice %79 {offsets = [0, 96], sizes = [2, 32], strides = [1, 1]} : vector<2x128xf32> to vector<2x32xf32>
    %cst_50 = arith.constant 1.000000e+00 : f32
    %92 = vector.broadcast %cst_50 : f32 to vector<2x32xf32>
    %93 = arith.addf %91, %92 : vector<2x32xf32>
    %cst_51 = arith.constant 5.000000e-01 : f32
    %94 = vector.broadcast %cst_51 : f32 to vector<2x32xf32>
    %95 = arith.mulf %94, %93 : vector<2x32xf32>
    %96 = arith.mulf %89, %69 : vector<2x32xf32>
    %97 = arith.mulf %84, %90 : vector<2x32xf32>
    %98 = arith.addf %96, %97 : vector<2x32xf32>
    %99 = math.tanh %98 : vector<2x32xf32>
    %100 = arith.mulf %95, %99 : vector<2x32xf32>
    %c0_52 = arith.constant 0 : index
    %c2_53 = arith.constant 2 : index
    %c0_54 = arith.constant 0 : index
    %101 = vector.load %arg13[%c0_52, %c2_53, %c0_54] : memref<2x8x32xf32, #tpu.memory_space<vmem>>, vector<2x1x32xf32>
    %102 = vector.shape_cast %101 : vector<2x1x32xf32> to vector<2x32xf32>
    %103 = vector.shape_cast %100 : vector<2x32xf32> to vector<2x1x32xf32>
    tpu.vector_store %arg13[%c0_52, %c2_53, %c0_54], %103 {strides = array<i32>} : memref<2x8x32xf32, #tpu.memory_space<vmem>>, vector<2x1x32xf32>,
    %c0_55 = arith.constant 0 : index
    %c3 = arith.constant 3 : index
    %c0_56 = arith.constant 0 : index
    %104 = vector.load %arg12[%c0_55, %c3, %c0_56] : memref<2x8x128xf32, #tpu.memory_space<vmem>>, vector<2x1x128xf32>
    %105 = vector.shape_cast %104 : vector<2x1x128xf32> to vector<2x128xf32>
    %cst_57 = arith.constant dense<0.000000e+00> : vector<2x128xf32>
    %106 = tpu.matmul %100, %4, %cst_57 {dimension_numbers = #tpu.dot_dimension_numbers<[1], [0], [0], [1], [0, 0, 1, 1], [], []>} : vector<2x32xf32>, vector<32x128xf32>, vector<2x128xf32> -> vector<2x128xf32>
    %107 = arith.addf %105, %106 : vector<2x128xf32>
    %108 = math.tanh %107 : vector<2x128xf32>
    %109 = vector.extract_strided_slice %108 {offsets = [0, 0], sizes = [2, 32], strides = [1, 1]} : vector<2x128xf32> to vector<2x32xf32>
    %cst_58 = arith.constant 1.000000e+00 : f32
    %110 = vector.broadcast %cst_58 : f32 to vector<2x32xf32>
    %111 = arith.addf %109, %110 : vector<2x32xf32>
    %cst_59 = arith.constant 5.000000e-01 : f32
    %112 = vector.broadcast %cst_59 : f32 to vector<2x32xf32>
    %113 = arith.mulf %112, %111 : vector<2x32xf32>
    %114 = vector.extract_strided_slice %108 {offsets = [0, 32], sizes = [2, 32], strides = [1, 1]} : vector<2x128xf32> to vector<2x32xf32>
    %cst_60 = arith.constant 1.000000e+00 : f32
    %115 = vector.broadcast %cst_60 : f32 to vector<2x32xf32>
    %116 = arith.addf %114, %115 : vector<2x32xf32>
    %cst_61 = arith.constant 5.000000e-01 : f32
    %117 = vector.broadcast %cst_61 : f32 to vector<2x32xf32>
    %118 = arith.mulf %117, %116 : vector<2x32xf32>
    %119 = vector.extract_strided_slice %108 {offsets = [0, 64], sizes = [2, 32], strides = [1, 1]} : vector<2x128xf32> to vector<2x32xf32>
    %120 = vector.extract_strided_slice %108 {offsets = [0, 96], sizes = [2, 32], strides = [1, 1]} : vector<2x128xf32> to vector<2x32xf32>
    %cst_62 = arith.constant 1.000000e+00 : f32
    %121 = vector.broadcast %cst_62 : f32 to vector<2x32xf32>
    %122 = arith.addf %120, %121 : vector<2x32xf32>
    %cst_63 = arith.constant 5.000000e-01 : f32
    %123 = vector.broadcast %cst_63 : f32 to vector<2x32xf32>
    %124 = arith.mulf %123, %122 : vector<2x32xf32>
    %125 = arith.mulf %118, %98 : vector<2x32xf32>
    %126 = arith.mulf %113, %119 : vector<2x32xf32>
    %127 = arith.addf %125, %126 : vector<2x32xf32>
    %128 = math.tanh %127 : vector<2x32xf32>
    %129 = arith.mulf %124, %128 : vector<2x32xf32>
    %c0_64 = arith.constant 0 : index
    %c3_65 = arith.constant 3 : index
    %c0_66 = arith.constant 0 : index
    %130 = vector.load %arg13[%c0_64, %c3_65, %c0_66] : memref<2x8x32xf32, #tpu.memory_space<vmem>>, vector<2x1x32xf32>
    %131 = vector.shape_cast %130 : vector<2x1x32xf32> to vector<2x32xf32>
    %132 = vector.shape_cast %129 : vector<2x32xf32> to vector<2x1x32xf32>
    tpu.vector_store %arg13[%c0_64, %c3_65, %c0_66], %132 {strides = array<i32>} : memref<2x8x32xf32, #tpu.memory_space<vmem>>, vector<2x1x32xf32>,
    %c0_67 = arith.constant 0 : index
    %c4 = arith.constant 4 : index
    %c0_68 = arith.constant 0 : index
    %133 = vector.load %arg12[%c0_67, %c4, %c0_68] : memref<2x8x128xf32, #tpu.memory_space<vmem>>, vector<2x1x128xf32>
    %134 = vector.shape_cast %133 : vector<2x1x128xf32> to vector<2x128xf32>
    %cst_69 = arith.constant dense<0.000000e+00> : vector<2x128xf32>
    %135 = tpu.matmul %129, %4, %cst_69 {dimension_numbers = #tpu.dot_dimension_numbers<[1], [0], [0], [1], [0, 0, 1, 1], [], []>} : vector<2x32xf32>, vector<32x128xf32>, vector<2x128xf32> -> vector<2x128xf32>
    %136 = arith.addf %134, %135 : vector<2x128xf32>
    %137 = math.tanh %136 : vector<2x128xf32>
    %138 = vector.extract_strided_slice %137 {offsets = [0, 0], sizes = [2, 32], strides = [1, 1]} : vector<2x128xf32> to vector<2x32xf32>
    %cst_70 = arith.constant 1.000000e+00 : f32
    %139 = vector.broadcast %cst_70 : f32 to vector<2x32xf32>
    %140 = arith.addf %138, %139 : vector<2x32xf32>
    %cst_71 = arith.constant 5.000000e-01 : f32
    %141 = vector.broadcast %cst_71 : f32 to vector<2x32xf32>
    %142 = arith.mulf %141, %140 : vector<2x32xf32>
    %143 = vector.extract_strided_slice %137 {offsets = [0, 32], sizes = [2, 32], strides = [1, 1]} : vector<2x128xf32> to vector<2x32xf32>
    %cst_72 = arith.constant 1.000000e+00 : f32
    %144 = vector.broadcast %cst_72 : f32 to vector<2x32xf32>
    %145 = arith.addf %143, %144 : vector<2x32xf32>
    %cst_73 = arith.constant 5.000000e-01 : f32
    %146 = vector.broadcast %cst_73 : f32 to vector<2x32xf32>
    %147 = arith.mulf %146, %145 : vector<2x32xf32>
    %148 = vector.extract_strided_slice %137 {offsets = [0, 64], sizes = [2, 32], strides = [1, 1]} : vector<2x128xf32> to vector<2x32xf32>
    %149 = vector.extract_strided_slice %137 {offsets = [0, 96], sizes = [2, 32], strides = [1, 1]} : vector<2x128xf32> to vector<2x32xf32>
    %cst_74 = arith.constant 1.000000e+00 : f32
    %150 = vector.broadcast %cst_74 : f32 to vector<2x32xf32>
    %151 = arith.addf %149, %150 : vector<2x32xf32>
    %cst_75 = arith.constant 5.000000e-01 : f32
    %152 = vector.broadcast %cst_75 : f32 to vector<2x32xf32>
    %153 = arith.mulf %152, %151 : vector<2x32xf32>
    %154 = arith.mulf %147, %127 : vector<2x32xf32>
    %155 = arith.mulf %142, %148 : vector<2x32xf32>
    %156 = arith.addf %154, %155 : vector<2x32xf32>
    %157 = math.tanh %156 : vector<2x32xf32>
    %158 = arith.mulf %153, %157 : vector<2x32xf32>
    %c0_76 = arith.constant 0 : index
    %c4_77 = arith.constant 4 : index
    %c0_78 = arith.constant 0 : index
    %159 = vector.load %arg13[%c0_76, %c4_77, %c0_78] : memref<2x8x32xf32, #tpu.memory_space<vmem>>, vector<2x1x32xf32>
    %160 = vector.shape_cast %159 : vector<2x1x32xf32> to vector<2x32xf32>
    %161 = vector.shape_cast %158 : vector<2x32xf32> to vector<2x1x32xf32>
    tpu.vector_store %arg13[%c0_76, %c4_77, %c0_78], %161 {strides = array<i32>} : memref<2x8x32xf32, #tpu.memory_space<vmem>>, vector<2x1x32xf32>,
    %c0_79 = arith.constant 0 : index
    %c5 = arith.constant 5 : index
    %c0_80 = arith.constant 0 : index
    %162 = vector.load %arg12[%c0_79, %c5, %c0_80] : memref<2x8x128xf32, #tpu.memory_space<vmem>>, vector<2x1x128xf32>
    %163 = vector.shape_cast %162 : vector<2x1x128xf32> to vector<2x128xf32>
    %cst_81 = arith.constant dense<0.000000e+00> : vector<2x128xf32>
    %164 = tpu.matmul %158, %4, %cst_81 {dimension_numbers = #tpu.dot_dimension_numbers<[1], [0], [0], [1], [0, 0, 1, 1], [], []>} : vector<2x32xf32>, vector<32x128xf32>, vector<2x128xf32> -> vector<2x128xf32>
    %165 = arith.addf %163, %164 : vector<2x128xf32>
    %166 = math.tanh %165 : vector<2x128xf32>
    %167 = vector.extract_strided_slice %166 {offsets = [0, 0], sizes = [2, 32], strides = [1, 1]} : vector<2x128xf32> to vector<2x32xf32>
    %cst_82 = arith.constant 1.000000e+00 : f32
    %168 = vector.broadcast %cst_82 : f32 to vector<2x32xf32>
    %169 = arith.addf %167, %168 : vector<2x32xf32>
    %cst_83 = arith.constant 5.000000e-01 : f32
    %170 = vector.broadcast %cst_83 : f32 to vector<2x32xf32>
    %171 = arith.mulf %170, %169 : vector<2x32xf32>
    %172 = vector.extract_strided_slice %166 {offsets = [0, 32], sizes = [2, 32], strides = [1, 1]} : vector<2x128xf32> to vector<2x32xf32>
    %cst_84 = arith.constant 1.000000e+00 : f32
    %173 = vector.broadcast %cst_84 : f32 to vector<2x32xf32>
    %174 = arith.addf %172, %173 : vector<2x32xf32>
    %cst_85 = arith.constant 5.000000e-01 : f32
    %175 = vector.broadcast %cst_85 : f32 to vector<2x32xf32>
    %176 = arith.mulf %175, %174 : vector<2x32xf32>
    %177 = vector.extract_strided_slice %166 {offsets = [0, 64], sizes = [2, 32], strides = [1, 1]} : vector<2x128xf32> to vector<2x32xf32>
    %178 = vector.extract_strided_slice %166 {offsets = [0, 96], sizes = [2, 32], strides = [1, 1]} : vector<2x128xf32> to vector<2x32xf32>
    %cst_86 = arith.constant 1.000000e+00 : f32
    %179 = vector.broadcast %cst_86 : f32 to vector<2x32xf32>
    %180 = arith.addf %178, %179 : vector<2x32xf32>
    %cst_87 = arith.constant 5.000000e-01 : f32
    %181 = vector.broadcast %cst_87 : f32 to vector<2x32xf32>
    %182 = arith.mulf %181, %180 : vector<2x32xf32>
    %183 = arith.mulf %176, %156 : vector<2x32xf32>
    %184 = arith.mulf %171, %177 : vector<2x32xf32>
    %185 = arith.addf %183, %184 : vector<2x32xf32>
    %186 = math.tanh %185 : vector<2x32xf32>
    %187 = arith.mulf %182, %186 : vector<2x32xf32>
    %c0_88 = arith.constant 0 : index
    %c5_89 = arith.constant 5 : index
    %c0_90 = arith.constant 0 : index
    %188 = vector.load %arg13[%c0_88, %c5_89, %c0_90] : memref<2x8x32xf32, #tpu.memory_space<vmem>>, vector<2x1x32xf32>
    %189 = vector.shape_cast %188 : vector<2x1x32xf32> to vector<2x32xf32>
    %190 = vector.shape_cast %187 : vector<2x32xf32> to vector<2x1x32xf32>
    tpu.vector_store %arg13[%c0_88, %c5_89, %c0_90], %190 {strides = array<i32>} : memref<2x8x32xf32, #tpu.memory_space<vmem>>, vector<2x1x32xf32>,
    %c0_91 = arith.constant 0 : index
    %c6 = arith.constant 6 : index
    %c0_92 = arith.constant 0 : index
    %191 = vector.load %arg12[%c0_91, %c6, %c0_92] : memref<2x8x128xf32, #tpu.memory_space<vmem>>, vector<2x1x128xf32>
    %192 = vector.shape_cast %191 : vector<2x1x128xf32> to vector<2x128xf32>
    %cst_93 = arith.constant dense<0.000000e+00> : vector<2x128xf32>
    %193 = tpu.matmul %187, %4, %cst_93 {dimension_numbers = #tpu.dot_dimension_numbers<[1], [0], [0], [1], [0, 0, 1, 1], [], []>} : vector<2x32xf32>, vector<32x128xf32>, vector<2x128xf32> -> vector<2x128xf32>
    %194 = arith.addf %192, %193 : vector<2x128xf32>
    %195 = math.tanh %194 : vector<2x128xf32>
    %196 = vector.extract_strided_slice %195 {offsets = [0, 0], sizes = [2, 32], strides = [1, 1]} : vector<2x128xf32> to vector<2x32xf32>
    %cst_94 = arith.constant 1.000000e+00 : f32
    %197 = vector.broadcast %cst_94 : f32 to vector<2x32xf32>
    %198 = arith.addf %196, %197 : vector<2x32xf32>
    %cst_95 = arith.constant 5.000000e-01 : f32
    %199 = vector.broadcast %cst_95 : f32 to vector<2x32xf32>
    %200 = arith.mulf %199, %198 : vector<2x32xf32>
    %201 = vector.extract_strided_slice %195 {offsets = [0, 32], sizes = [2, 32], strides = [1, 1]} : vector<2x128xf32> to vector<2x32xf32>
    %cst_96 = arith.constant 1.000000e+00 : f32
    %202 = vector.broadcast %cst_96 : f32 to vector<2x32xf32>
    %203 = arith.addf %201, %202 : vector<2x32xf32>
    %cst_97 = arith.constant 5.000000e-01 : f32
    %204 = vector.broadcast %cst_97 : f32 to vector<2x32xf32>
    %205 = arith.mulf %204, %203 : vector<2x32xf32>
    %206 = vector.extract_strided_slice %195 {offsets = [0, 64], sizes = [2, 32], strides = [1, 1]} : vector<2x128xf32> to vector<2x32xf32>
    %207 = vector.extract_strided_slice %195 {offsets = [0, 96], sizes = [2, 32], strides = [1, 1]} : vector<2x128xf32> to vector<2x32xf32>
    %cst_98 = arith.constant 1.000000e+00 : f32
    %208 = vector.broadcast %cst_98 : f32 to vector<2x32xf32>
    %209 = arith.addf %207, %208 : vector<2x32xf32>
    %cst_99 = arith.constant 5.000000e-01 : f32
    %210 = vector.broadcast %cst_99 : f32 to vector<2x32xf32>
    %211 = arith.mulf %210, %209 : vector<2x32xf32>
    %212 = arith.mulf %205, %185 : vector<2x32xf32>
    %213 = arith.mulf %200, %206 : vector<2x32xf32>
    %214 = arith.addf %212, %213 : vector<2x32xf32>
    %215 = math.tanh %214 : vector<2x32xf32>
    %216 = arith.mulf %211, %215 : vector<2x32xf32>
    %c0_100 = arith.constant 0 : index
    %c6_101 = arith.constant 6 : index
    %c0_102 = arith.constant 0 : index
    %217 = vector.load %arg13[%c0_100, %c6_101, %c0_102] : memref<2x8x32xf32, #tpu.memory_space<vmem>>, vector<2x1x32xf32>
    %218 = vector.shape_cast %217 : vector<2x1x32xf32> to vector<2x32xf32>
    %219 = vector.shape_cast %216 : vector<2x32xf32> to vector<2x1x32xf32>
    tpu.vector_store %arg13[%c0_100, %c6_101, %c0_102], %219 {strides = array<i32>} : memref<2x8x32xf32, #tpu.memory_space<vmem>>, vector<2x1x32xf32>,
    %c0_103 = arith.constant 0 : index
    %c7 = arith.constant 7 : index
    %c0_104 = arith.constant 0 : index
    %220 = vector.load %arg12[%c0_103, %c7, %c0_104] : memref<2x8x128xf32, #tpu.memory_space<vmem>>, vector<2x1x128xf32>
    %221 = vector.shape_cast %220 : vector<2x1x128xf32> to vector<2x128xf32>
    %cst_105 = arith.constant dense<0.000000e+00> : vector<2x128xf32>
    %222 = tpu.matmul %216, %4, %cst_105 {dimension_numbers = #tpu.dot_dimension_numbers<[1], [0], [0], [1], [0, 0, 1, 1], [], []>} : vector<2x32xf32>, vector<32x128xf32>, vector<2x128xf32> -> vector<2x128xf32>
    %223 = arith.addf %221, %222 : vector<2x128xf32>
    %224 = math.tanh %223 : vector<2x128xf32>
    %225 = vector.extract_strided_slice %224 {offsets = [0, 0], sizes = [2, 32], strides = [1, 1]} : vector<2x128xf32> to vector<2x32xf32>
    %cst_106 = arith.constant 1.000000e+00 : f32
    %226 = vector.broadcast %cst_106 : f32 to vector<2x32xf32>
    %227 = arith.addf %225, %226 : vector<2x32xf32>
    %cst_107 = arith.constant 5.000000e-01 : f32
    %228 = vector.broadcast %cst_107 : f32 to vector<2x32xf32>
    %229 = arith.mulf %228, %227 : vector<2x32xf32>
    %230 = vector.extract_strided_slice %224 {offsets = [0, 32], sizes = [2, 32], strides = [1, 1]} : vector<2x128xf32> to vector<2x32xf32>
    %cst_108 = arith.constant 1.000000e+00 : f32
    %231 = vector.broadcast %cst_108 : f32 to vector<2x32xf32>
    %232 = arith.addf %230, %231 : vector<2x32xf32>
    %cst_109 = arith.constant 5.000000e-01 : f32
    %233 = vector.broadcast %cst_109 : f32 to vector<2x32xf32>
    %234 = arith.mulf %233, %232 : vector<2x32xf32>
    %235 = vector.extract_strided_slice %224 {offsets = [0, 64], sizes = [2, 32], strides = [1, 1]} : vector<2x128xf32> to vector<2x32xf32>
    %236 = vector.extract_strided_slice %224 {offsets = [0, 96], sizes = [2, 32], strides = [1, 1]} : vector<2x128xf32> to vector<2x32xf32>
    %cst_110 = arith.constant 1.000000e+00 : f32
    %237 = vector.broadcast %cst_110 : f32 to vector<2x32xf32>
    %238 = arith.addf %236, %237 : vector<2x32xf32>
    %cst_111 = arith.constant 5.000000e-01 : f32
    %239 = vector.broadcast %cst_111 : f32 to vector<2x32xf32>
    %240 = arith.mulf %239, %238 : vector<2x32xf32>
    %241 = arith.mulf %234, %214 : vector<2x32xf32>
    %242 = arith.mulf %229, %235 : vector<2x32xf32>
    %243 = arith.addf %241, %242 : vector<2x32xf32>
    %244 = math.tanh %243 : vector<2x32xf32>
    %245 = arith.mulf %240, %244 : vector<2x32xf32>
    %c0_112 = arith.constant 0 : index
    %c7_113 = arith.constant 7 : index
    %c0_114 = arith.constant 0 : index
    %246 = vector.load %arg13[%c0_112, %c7_113, %c0_114] : memref<2x8x32xf32, #tpu.memory_space<vmem>>, vector<2x1x32xf32>
    %247 = vector.shape_cast %246 : vector<2x1x32xf32> to vector<2x32xf32>
    %248 = vector.shape_cast %245 : vector<2x32xf32> to vector<2x1x32xf32>
    tpu.vector_store %arg13[%c0_112, %c7_113, %c0_114], %248 {strides = array<i32>} : memref<2x8x32xf32, #tpu.memory_space<vmem>>, vector<2x1x32xf32>,
    %c0_115 = arith.constant 0 : index
    %c0_116 = arith.constant 0 : index
    %c0_117 = arith.constant 0 : index
    %249 = vector.load %arg10[%c0_115, %c0_116, %c0_117] : memref<2x2x32xf32, #tpu.memory_space<vmem>>, vector<1x2x32xf32>
    %250 = vector.shape_cast %249 : vector<1x2x32xf32> to vector<2x32xf32>
    %251 = vector.shape_cast %245 : vector<2x32xf32> to vector<1x2x32xf32>
    tpu.vector_store %arg10[%c0_115, %c0_116, %c0_117], %251 {strides = array<i32>} : memref<2x2x32xf32, #tpu.memory_space<vmem>>, vector<1x2x32xf32>,
    %c0_118 = arith.constant 0 : index
    %c0_119 = arith.constant 0 : index
    %c0_120 = arith.constant 0 : index
    %252 = vector.load %arg11[%c0_118, %c0_119, %c0_120] : memref<2x2x32xf32, #tpu.memory_space<vmem>>, vector<1x2x32xf32>
    %253 = vector.shape_cast %252 : vector<1x2x32xf32> to vector<2x32xf32>
    %254 = vector.shape_cast %243 : vector<2x32xf32> to vector<1x2x32xf32>
    tpu.vector_store %arg11[%c0_118, %c0_119, %c0_120], %254 {strides = array<i32>} : memref<2x2x32xf32, #tpu.memory_space<vmem>>, vector<1x2x32xf32>,
    %c0_121 = arith.constant 0 : index
    %c0_122 = arith.constant 0 : index
    %255 = vector.load %arg6[%c0_121, %c0_122] : memref<32x128xf32, #tpu.memory_space<vmem>>, vector<32x128xf32>
    %c0_123 = arith.constant 0 : index
    %c0_124 = arith.constant 0 : index
    %256 = vector.load %arg7[%c0_123, %c0_124] : memref<32x128xf32, #tpu.memory_space<vmem>>, vector<32x128xf32>
    %c0_125 = arith.constant 0 : index
    %c0_126 = arith.constant 0 : index
    %257 = vector.load %arg8[%c0_125, %c0_126] : memref<1x128xf32, #tpu.memory_space<vmem>>, vector<1x128xf32>
    %c0_127 = arith.constant 0 : index
    %c0_128 = arith.constant 0 : index
    %c0_129 = arith.constant 0 : index
    %258 = vector.load %arg13[%c0_127, %c0_128, %c0_129] : memref<2x8x32xf32, #tpu.memory_space<vmem>>, vector<2x8x32xf32>
    %259 = vector.shape_cast %258 : vector<2x8x32xf32> to vector<16x32xf32>
    %cst_130 = arith.constant dense<0.000000e+00> : vector<16x128xf32>
    %260 = tpu.matmul %259, %255, %cst_130 {dimension_numbers = #tpu.dot_dimension_numbers<[1], [0], [0], [1], [0, 0, 1, 1], [], []>} : vector<16x32xf32>, vector<32x128xf32>, vector<16x128xf32> -> vector<16x128xf32>
    %261 = vector.broadcast %257 : vector<1x128xf32> to vector<16x128xf32>
    %262 = arith.addf %260, %261 : vector<16x128xf32>
    %263 = vector.shape_cast %262 : vector<16x128xf32> to vector<2x8x128xf32>
    %c0_131 = arith.constant 0 : index
    %c0_132 = arith.constant 0 : index
    %c0_133 = arith.constant 0 : index
    %264 = vector.load %arg12[%c0_131, %c0_132, %c0_133] : memref<2x8x128xf32, #tpu.memory_space<vmem>>, vector<2x8x128xf32>
    tpu.vector_store %arg12[%c0_131, %c0_132, %c0_133], %263 {strides = array<i32>} : memref<2x8x128xf32, #tpu.memory_space<vmem>>, vector<2x8x128xf32>,
    %c1_134 = arith.constant 1 : index
    %c0_135 = arith.constant 0 : index
    %c0_136 = arith.constant 0 : index
    %265 = vector.load %arg10[%c1_134, %c0_135, %c0_136] : memref<2x2x32xf32, #tpu.memory_space<vmem>>, vector<1x2x32xf32>
    %266 = vector.shape_cast %265 : vector<1x2x32xf32> to vector<2x32xf32>
    %c1_137 = arith.constant 1 : index
    %c0_138 = arith.constant 0 : index
    %c0_139 = arith.constant 0 : index
    %267 = vector.load %arg11[%c1_137, %c0_138, %c0_139] : memref<2x2x32xf32, #tpu.memory_space<vmem>>, vector<1x2x32xf32>
    %268 = vector.shape_cast %267 : vector<1x2x32xf32> to vector<2x32xf32>
    %c0_140 = arith.constant 0 : index
    %c0_141 = arith.constant 0 : index
    %c0_142 = arith.constant 0 : index
    %269 = vector.load %arg12[%c0_140, %c0_141, %c0_142] : memref<2x8x128xf32, #tpu.memory_space<vmem>>, vector<2x1x128xf32>
    %270 = vector.shape_cast %269 : vector<2x1x128xf32> to vector<2x128xf32>
    %cst_143 = arith.constant dense<0.000000e+00> : vector<2x128xf32>
    %271 = tpu.matmul %266, %256, %cst_143 {dimension_numbers = #tpu.dot_dimension_numbers<[1], [0], [0], [1], [0, 0, 1, 1], [], []>} : vector<2x32xf32>, vector<32x128xf32>, vector<2x128xf32> -> vector<2x128xf32>
    %272 = arith.addf %270, %271 : vector<2x128xf32>
    %273 = math.tanh %272 : vector<2x128xf32>
    %274 = vector.extract_strided_slice %273 {offsets = [0, 0], sizes = [2, 32], strides = [1, 1]} : vector<2x128xf32> to vector<2x32xf32>
    %cst_144 = arith.constant 1.000000e+00 : f32
    %275 = vector.broadcast %cst_144 : f32 to vector<2x32xf32>
    %276 = arith.addf %274, %275 : vector<2x32xf32>
    %cst_145 = arith.constant 5.000000e-01 : f32
    %277 = vector.broadcast %cst_145 : f32 to vector<2x32xf32>
    %278 = arith.mulf %277, %276 : vector<2x32xf32>
    %279 = vector.extract_strided_slice %273 {offsets = [0, 32], sizes = [2, 32], strides = [1, 1]} : vector<2x128xf32> to vector<2x32xf32>
    %cst_146 = arith.constant 1.000000e+00 : f32
    %280 = vector.broadcast %cst_146 : f32 to vector<2x32xf32>
    %281 = arith.addf %279, %280 : vector<2x32xf32>
    %cst_147 = arith.constant 5.000000e-01 : f32
    %282 = vector.broadcast %cst_147 : f32 to vector<2x32xf32>
    %283 = arith.mulf %282, %281 : vector<2x32xf32>
    %284 = vector.extract_strided_slice %273 {offsets = [0, 64], sizes = [2, 32], strides = [1, 1]} : vector<2x128xf32> to vector<2x32xf32>
    %285 = vector.extract_strided_slice %273 {offsets = [0, 96], sizes = [2, 32], strides = [1, 1]} : vector<2x128xf32> to vector<2x32xf32>
    %cst_148 = arith.constant 1.000000e+00 : f32
    %286 = vector.broadcast %cst_148 : f32 to vector<2x32xf32>
    %287 = arith.addf %285, %286 : vector<2x32xf32>
    %cst_149 = arith.constant 5.000000e-01 : f32
    %288 = vector.broadcast %cst_149 : f32 to vector<2x32xf32>
    %289 = arith.mulf %288, %287 : vector<2x32xf32>
    %290 = arith.mulf %283, %268 : vector<2x32xf32>
    %291 = arith.mulf %278, %284 : vector<2x32xf32>
    %292 = arith.addf %290, %291 : vector<2x32xf32>
    %293 = math.tanh %292 : vector<2x32xf32>
    %294 = arith.mulf %289, %293 : vector<2x32xf32>
    %c0_150 = arith.constant 0 : index
    %c1_151 = arith.constant 1 : index
    %c0_152 = arith.constant 0 : index
    %295 = vector.load %arg12[%c0_150, %c1_151, %c0_152] : memref<2x8x128xf32, #tpu.memory_space<vmem>>, vector<2x1x128xf32>
    %296 = vector.shape_cast %295 : vector<2x1x128xf32> to vector<2x128xf32>
    %cst_153 = arith.constant dense<0.000000e+00> : vector<2x128xf32>
    %297 = tpu.matmul %294, %256, %cst_153 {dimension_numbers = #tpu.dot_dimension_numbers<[1], [0], [0], [1], [0, 0, 1, 1], [], []>} : vector<2x32xf32>, vector<32x128xf32>, vector<2x128xf32> -> vector<2x128xf32>
    %298 = arith.addf %296, %297 : vector<2x128xf32>
    %299 = math.tanh %298 : vector<2x128xf32>
    %300 = vector.extract_strided_slice %299 {offsets = [0, 0], sizes = [2, 32], strides = [1, 1]} : vector<2x128xf32> to vector<2x32xf32>
    %cst_154 = arith.constant 1.000000e+00 : f32
    %301 = vector.broadcast %cst_154 : f32 to vector<2x32xf32>
    %302 = arith.addf %300, %301 : vector<2x32xf32>
    %cst_155 = arith.constant 5.000000e-01 : f32
    %303 = vector.broadcast %cst_155 : f32 to vector<2x32xf32>
    %304 = arith.mulf %303, %302 : vector<2x32xf32>
    %305 = vector.extract_strided_slice %299 {offsets = [0, 32], sizes = [2, 32], strides = [1, 1]} : vector<2x128xf32> to vector<2x32xf32>
    %cst_156 = arith.constant 1.000000e+00 : f32
    %306 = vector.broadcast %cst_156 : f32 to vector<2x32xf32>
    %307 = arith.addf %305, %306 : vector<2x32xf32>
    %cst_157 = arith.constant 5.000000e-01 : f32
    %308 = vector.broadcast %cst_157 : f32 to vector<2x32xf32>
    %309 = arith.mulf %308, %307 : vector<2x32xf32>
    %310 = vector.extract_strided_slice %299 {offsets = [0, 64], sizes = [2, 32], strides = [1, 1]} : vector<2x128xf32> to vector<2x32xf32>
    %311 = vector.extract_strided_slice %299 {offsets = [0, 96], sizes = [2, 32], strides = [1, 1]} : vector<2x128xf32> to vector<2x32xf32>
    %cst_158 = arith.constant 1.000000e+00 : f32
    %312 = vector.broadcast %cst_158 : f32 to vector<2x32xf32>
    %313 = arith.addf %311, %312 : vector<2x32xf32>
    %cst_159 = arith.constant 5.000000e-01 : f32
    %314 = vector.broadcast %cst_159 : f32 to vector<2x32xf32>
    %315 = arith.mulf %314, %313 : vector<2x32xf32>
    %316 = arith.mulf %309, %292 : vector<2x32xf32>
    %317 = arith.mulf %304, %310 : vector<2x32xf32>
    %318 = arith.addf %316, %317 : vector<2x32xf32>
    %319 = math.tanh %318 : vector<2x32xf32>
    %320 = arith.mulf %315, %319 : vector<2x32xf32>
    %c0_160 = arith.constant 0 : index
    %c2_161 = arith.constant 2 : index
    %c0_162 = arith.constant 0 : index
    %321 = vector.load %arg12[%c0_160, %c2_161, %c0_162] : memref<2x8x128xf32, #tpu.memory_space<vmem>>, vector<2x1x128xf32>
    %322 = vector.shape_cast %321 : vector<2x1x128xf32> to vector<2x128xf32>
    %cst_163 = arith.constant dense<0.000000e+00> : vector<2x128xf32>
    %323 = tpu.matmul %320, %256, %cst_163 {dimension_numbers = #tpu.dot_dimension_numbers<[1], [0], [0], [1], [0, 0, 1, 1], [], []>} : vector<2x32xf32>, vector<32x128xf32>, vector<2x128xf32> -> vector<2x128xf32>
    %324 = arith.addf %322, %323 : vector<2x128xf32>
    %325 = math.tanh %324 : vector<2x128xf32>
    %326 = vector.extract_strided_slice %325 {offsets = [0, 0], sizes = [2, 32], strides = [1, 1]} : vector<2x128xf32> to vector<2x32xf32>
    %cst_164 = arith.constant 1.000000e+00 : f32
    %327 = vector.broadcast %cst_164 : f32 to vector<2x32xf32>
    %328 = arith.addf %326, %327 : vector<2x32xf32>
    %cst_165 = arith.constant 5.000000e-01 : f32
    %329 = vector.broadcast %cst_165 : f32 to vector<2x32xf32>
    %330 = arith.mulf %329, %328 : vector<2x32xf32>
    %331 = vector.extract_strided_slice %325 {offsets = [0, 32], sizes = [2, 32], strides = [1, 1]} : vector<2x128xf32> to vector<2x32xf32>
    %cst_166 = arith.constant 1.000000e+00 : f32
    %332 = vector.broadcast %cst_166 : f32 to vector<2x32xf32>
    %333 = arith.addf %331, %332 : vector<2x32xf32>
    %cst_167 = arith.constant 5.000000e-01 : f32
    %334 = vector.broadcast %cst_167 : f32 to vector<2x32xf32>
    %335 = arith.mulf %334, %333 : vector<2x32xf32>
    %336 = vector.extract_strided_slice %325 {offsets = [0, 64], sizes = [2, 32], strides = [1, 1]} : vector<2x128xf32> to vector<2x32xf32>
    %337 = vector.extract_strided_slice %325 {offsets = [0, 96], sizes = [2, 32], strides = [1, 1]} : vector<2x128xf32> to vector<2x32xf32>
    %cst_168 = arith.constant 1.000000e+00 : f32
    %338 = vector.broadcast %cst_168 : f32 to vector<2x32xf32>
    %339 = arith.addf %337, %338 : vector<2x32xf32>
    %cst_169 = arith.constant 5.000000e-01 : f32
    %340 = vector.broadcast %cst_169 : f32 to vector<2x32xf32>
    %341 = arith.mulf %340, %339 : vector<2x32xf32>
    %342 = arith.mulf %335, %318 : vector<2x32xf32>
    %343 = arith.mulf %330, %336 : vector<2x32xf32>
    %344 = arith.addf %342, %343 : vector<2x32xf32>
    %345 = math.tanh %344 : vector<2x32xf32>
    %346 = arith.mulf %341, %345 : vector<2x32xf32>
    %c0_170 = arith.constant 0 : index
    %c3_171 = arith.constant 3 : index
    %c0_172 = arith.constant 0 : index
    %347 = vector.load %arg12[%c0_170, %c3_171, %c0_172] : memref<2x8x128xf32, #tpu.memory_space<vmem>>, vector<2x1x128xf32>
    %348 = vector.shape_cast %347 : vector<2x1x128xf32> to vector<2x128xf32>
    %cst_173 = arith.constant dense<0.000000e+00> : vector<2x128xf32>
    %349 = tpu.matmul %346, %256, %cst_173 {dimension_numbers = #tpu.dot_dimension_numbers<[1], [0], [0], [1], [0, 0, 1, 1], [], []>} : vector<2x32xf32>, vector<32x128xf32>, vector<2x128xf32> -> vector<2x128xf32>
    %350 = arith.addf %348, %349 : vector<2x128xf32>
    %351 = math.tanh %350 : vector<2x128xf32>
    %352 = vector.extract_strided_slice %351 {offsets = [0, 0], sizes = [2, 32], strides = [1, 1]} : vector<2x128xf32> to vector<2x32xf32>
    %cst_174 = arith.constant 1.000000e+00 : f32
    %353 = vector.broadcast %cst_174 : f32 to vector<2x32xf32>
    %354 = arith.addf %352, %353 : vector<2x32xf32>
    %cst_175 = arith.constant 5.000000e-01 : f32
    %355 = vector.broadcast %cst_175 : f32 to vector<2x32xf32>
    %356 = arith.mulf %355, %354 : vector<2x32xf32>
    %357 = vector.extract_strided_slice %351 {offsets = [0, 32], sizes = [2, 32], strides = [1, 1]} : vector<2x128xf32> to vector<2x32xf32>
    %cst_176 = arith.constant 1.000000e+00 : f32
    %358 = vector.broadcast %cst_176 : f32 to vector<2x32xf32>
    %359 = arith.addf %357, %358 : vector<2x32xf32>
    %cst_177 = arith.constant 5.000000e-01 : f32
    %360 = vector.broadcast %cst_177 : f32 to vector<2x32xf32>
    %361 = arith.mulf %360, %359 : vector<2x32xf32>
    %362 = vector.extract_strided_slice %351 {offsets = [0, 64], sizes = [2, 32], strides = [1, 1]} : vector<2x128xf32> to vector<2x32xf32>
    %363 = vector.extract_strided_slice %351 {offsets = [0, 96], sizes = [2, 32], strides = [1, 1]} : vector<2x128xf32> to vector<2x32xf32>
    %cst_178 = arith.constant 1.000000e+00 : f32
    %364 = vector.broadcast %cst_178 : f32 to vector<2x32xf32>
    %365 = arith.addf %363, %364 : vector<2x32xf32>
    %cst_179 = arith.constant 5.000000e-01 : f32
    %366 = vector.broadcast %cst_179 : f32 to vector<2x32xf32>
    %367 = arith.mulf %366, %365 : vector<2x32xf32>
    %368 = arith.mulf %361, %344 : vector<2x32xf32>
    %369 = arith.mulf %356, %362 : vector<2x32xf32>
    %370 = arith.addf %368, %369 : vector<2x32xf32>
    %371 = math.tanh %370 : vector<2x32xf32>
    %372 = arith.mulf %367, %371 : vector<2x32xf32>
    %c0_180 = arith.constant 0 : index
    %c4_181 = arith.constant 4 : index
    %c0_182 = arith.constant 0 : index
    %373 = vector.load %arg12[%c0_180, %c4_181, %c0_182] : memref<2x8x128xf32, #tpu.memory_space<vmem>>, vector<2x1x128xf32>
    %374 = vector.shape_cast %373 : vector<2x1x128xf32> to vector<2x128xf32>
    %cst_183 = arith.constant dense<0.000000e+00> : vector<2x128xf32>
    %375 = tpu.matmul %372, %256, %cst_183 {dimension_numbers = #tpu.dot_dimension_numbers<[1], [0], [0], [1], [0, 0, 1, 1], [], []>} : vector<2x32xf32>, vector<32x128xf32>, vector<2x128xf32> -> vector<2x128xf32>
    %376 = arith.addf %374, %375 : vector<2x128xf32>
    %377 = math.tanh %376 : vector<2x128xf32>
    %378 = vector.extract_strided_slice %377 {offsets = [0, 0], sizes = [2, 32], strides = [1, 1]} : vector<2x128xf32> to vector<2x32xf32>
    %cst_184 = arith.constant 1.000000e+00 : f32
    %379 = vector.broadcast %cst_184 : f32 to vector<2x32xf32>
    %380 = arith.addf %378, %379 : vector<2x32xf32>
    %cst_185 = arith.constant 5.000000e-01 : f32
    %381 = vector.broadcast %cst_185 : f32 to vector<2x32xf32>
    %382 = arith.mulf %381, %380 : vector<2x32xf32>
    %383 = vector.extract_strided_slice %377 {offsets = [0, 32], sizes = [2, 32], strides = [1, 1]} : vector<2x128xf32> to vector<2x32xf32>
    %cst_186 = arith.constant 1.000000e+00 : f32
    %384 = vector.broadcast %cst_186 : f32 to vector<2x32xf32>
    %385 = arith.addf %383, %384 : vector<2x32xf32>
    %cst_187 = arith.constant 5.000000e-01 : f32
    %386 = vector.broadcast %cst_187 : f32 to vector<2x32xf32>
    %387 = arith.mulf %386, %385 : vector<2x32xf32>
    %388 = vector.extract_strided_slice %377 {offsets = [0, 64], sizes = [2, 32], strides = [1, 1]} : vector<2x128xf32> to vector<2x32xf32>
    %389 = vector.extract_strided_slice %377 {offsets = [0, 96], sizes = [2, 32], strides = [1, 1]} : vector<2x128xf32> to vector<2x32xf32>
    %cst_188 = arith.constant 1.000000e+00 : f32
    %390 = vector.broadcast %cst_188 : f32 to vector<2x32xf32>
    %391 = arith.addf %389, %390 : vector<2x32xf32>
    %cst_189 = arith.constant 5.000000e-01 : f32
    %392 = vector.broadcast %cst_189 : f32 to vector<2x32xf32>
    %393 = arith.mulf %392, %391 : vector<2x32xf32>
    %394 = arith.mulf %387, %370 : vector<2x32xf32>
    %395 = arith.mulf %382, %388 : vector<2x32xf32>
    %396 = arith.addf %394, %395 : vector<2x32xf32>
    %397 = math.tanh %396 : vector<2x32xf32>
    %398 = arith.mulf %393, %397 : vector<2x32xf32>
    %c0_190 = arith.constant 0 : index
    %c5_191 = arith.constant 5 : index
    %c0_192 = arith.constant 0 : index
    %399 = vector.load %arg12[%c0_190, %c5_191, %c0_192] : memref<2x8x128xf32, #tpu.memory_space<vmem>>, vector<2x1x128xf32>
    %400 = vector.shape_cast %399 : vector<2x1x128xf32> to vector<2x128xf32>
    %cst_193 = arith.constant dense<0.000000e+00> : vector<2x128xf32>
    %401 = tpu.matmul %398, %256, %cst_193 {dimension_numbers = #tpu.dot_dimension_numbers<[1], [0], [0], [1], [0, 0, 1, 1], [], []>} : vector<2x32xf32>, vector<32x128xf32>, vector<2x128xf32> -> vector<2x128xf32>
    %402 = arith.addf %400, %401 : vector<2x128xf32>
    %403 = math.tanh %402 : vector<2x128xf32>
    %404 = vector.extract_strided_slice %403 {offsets = [0, 0], sizes = [2, 32], strides = [1, 1]} : vector<2x128xf32> to vector<2x32xf32>
    %cst_194 = arith.constant 1.000000e+00 : f32
    %405 = vector.broadcast %cst_194 : f32 to vector<2x32xf32>
    %406 = arith.addf %404, %405 : vector<2x32xf32>
    %cst_195 = arith.constant 5.000000e-01 : f32
    %407 = vector.broadcast %cst_195 : f32 to vector<2x32xf32>
    %408 = arith.mulf %407, %406 : vector<2x32xf32>
    %409 = vector.extract_strided_slice %403 {offsets = [0, 32], sizes = [2, 32], strides = [1, 1]} : vector<2x128xf32> to vector<2x32xf32>
    %cst_196 = arith.constant 1.000000e+00 : f32
    %410 = vector.broadcast %cst_196 : f32 to vector<2x32xf32>
    %411 = arith.addf %409, %410 : vector<2x32xf32>
    %cst_197 = arith.constant 5.000000e-01 : f32
    %412 = vector.broadcast %cst_197 : f32 to vector<2x32xf32>
    %413 = arith.mulf %412, %411 : vector<2x32xf32>
    %414 = vector.extract_strided_slice %403 {offsets = [0, 64], sizes = [2, 32], strides = [1, 1]} : vector<2x128xf32> to vector<2x32xf32>
    %415 = vector.extract_strided_slice %403 {offsets = [0, 96], sizes = [2, 32], strides = [1, 1]} : vector<2x128xf32> to vector<2x32xf32>
    %cst_198 = arith.constant 1.000000e+00 : f32
    %416 = vector.broadcast %cst_198 : f32 to vector<2x32xf32>
    %417 = arith.addf %415, %416 : vector<2x32xf32>
    %cst_199 = arith.constant 5.000000e-01 : f32
    %418 = vector.broadcast %cst_199 : f32 to vector<2x32xf32>
    %419 = arith.mulf %418, %417 : vector<2x32xf32>
    %420 = arith.mulf %413, %396 : vector<2x32xf32>
    %421 = arith.mulf %408, %414 : vector<2x32xf32>
    %422 = arith.addf %420, %421 : vector<2x32xf32>
    %423 = math.tanh %422 : vector<2x32xf32>
    %424 = arith.mulf %419, %423 : vector<2x32xf32>
    %c0_200 = arith.constant 0 : index
    %c6_201 = arith.constant 6 : index
    %c0_202 = arith.constant 0 : index
    %425 = vector.load %arg12[%c0_200, %c6_201, %c0_202] : memref<2x8x128xf32, #tpu.memory_space<vmem>>, vector<2x1x128xf32>
    %426 = vector.shape_cast %425 : vector<2x1x128xf32> to vector<2x128xf32>
    %cst_203 = arith.constant dense<0.000000e+00> : vector<2x128xf32>
    %427 = tpu.matmul %424, %256, %cst_203 {dimension_numbers = #tpu.dot_dimension_numbers<[1], [0], [0], [1], [0, 0, 1, 1], [], []>} : vector<2x32xf32>, vector<32x128xf32>, vector<2x128xf32> -> vector<2x128xf32>
    %428 = arith.addf %426, %427 : vector<2x128xf32>
    %429 = math.tanh %428 : vector<2x128xf32>
    %430 = vector.extract_strided_slice %429 {offsets = [0, 0], sizes = [2, 32], strides = [1, 1]} : vector<2x128xf32> to vector<2x32xf32>
    %cst_204 = arith.constant 1.000000e+00 : f32
    %431 = vector.broadcast %cst_204 : f32 to vector<2x32xf32>
    %432 = arith.addf %430, %431 : vector<2x32xf32>
    %cst_205 = arith.constant 5.000000e-01 : f32
    %433 = vector.broadcast %cst_205 : f32 to vector<2x32xf32>
    %434 = arith.mulf %433, %432 : vector<2x32xf32>
    %435 = vector.extract_strided_slice %429 {offsets = [0, 32], sizes = [2, 32], strides = [1, 1]} : vector<2x128xf32> to vector<2x32xf32>
    %cst_206 = arith.constant 1.000000e+00 : f32
    %436 = vector.broadcast %cst_206 : f32 to vector<2x32xf32>
    %437 = arith.addf %435, %436 : vector<2x32xf32>
    %cst_207 = arith.constant 5.000000e-01 : f32
    %438 = vector.broadcast %cst_207 : f32 to vector<2x32xf32>
    %439 = arith.mulf %438, %437 : vector<2x32xf32>
    %440 = vector.extract_strided_slice %429 {offsets = [0, 64], sizes = [2, 32], strides = [1, 1]} : vector<2x128xf32> to vector<2x32xf32>
    %441 = vector.extract_strided_slice %429 {offsets = [0, 96], sizes = [2, 32], strides = [1, 1]} : vector<2x128xf32> to vector<2x32xf32>
    %cst_208 = arith.constant 1.000000e+00 : f32
    %442 = vector.broadcast %cst_208 : f32 to vector<2x32xf32>
    %443 = arith.addf %441, %442 : vector<2x32xf32>
    %cst_209 = arith.constant 5.000000e-01 : f32
    %444 = vector.broadcast %cst_209 : f32 to vector<2x32xf32>
    %445 = arith.mulf %444, %443 : vector<2x32xf32>
    %446 = arith.mulf %439, %422 : vector<2x32xf32>
    %447 = arith.mulf %434, %440 : vector<2x32xf32>
    %448 = arith.addf %446, %447 : vector<2x32xf32>
    %449 = math.tanh %448 : vector<2x32xf32>
    %450 = arith.mulf %445, %449 : vector<2x32xf32>
    %c0_210 = arith.constant 0 : index
    %c7_211 = arith.constant 7 : index
    %c0_212 = arith.constant 0 : index
    %451 = vector.load %arg12[%c0_210, %c7_211, %c0_212] : memref<2x8x128xf32, #tpu.memory_space<vmem>>, vector<2x1x128xf32>
    %452 = vector.shape_cast %451 : vector<2x1x128xf32> to vector<2x128xf32>
    %cst_213 = arith.constant dense<0.000000e+00> : vector<2x128xf32>
    %453 = tpu.matmul %450, %256, %cst_213 {dimension_numbers = #tpu.dot_dimension_numbers<[1], [0], [0], [1], [0, 0, 1, 1], [], []>} : vector<2x32xf32>, vector<32x128xf32>, vector<2x128xf32> -> vector<2x128xf32>
    %454 = arith.addf %452, %453 : vector<2x128xf32>
    %455 = math.tanh %454 : vector<2x128xf32>
    %456 = vector.extract_strided_slice %455 {offsets = [0, 0], sizes = [2, 32], strides = [1, 1]} : vector<2x128xf32> to vector<2x32xf32>
    %cst_214 = arith.constant 1.000000e+00 : f32
    %457 = vector.broadcast %cst_214 : f32 to vector<2x32xf32>
    %458 = arith.addf %456, %457 : vector<2x32xf32>
    %cst_215 = arith.constant 5.000000e-01 : f32
    %459 = vector.broadcast %cst_215 : f32 to vector<2x32xf32>
    %460 = arith.mulf %459, %458 : vector<2x32xf32>
    %461 = vector.extract_strided_slice %455 {offsets = [0, 32], sizes = [2, 32], strides = [1, 1]} : vector<2x128xf32> to vector<2x32xf32>
    %cst_216 = arith.constant 1.000000e+00 : f32
    %462 = vector.broadcast %cst_216 : f32 to vector<2x32xf32>
    %463 = arith.addf %461, %462 : vector<2x32xf32>
    %cst_217 = arith.constant 5.000000e-01 : f32
    %464 = vector.broadcast %cst_217 : f32 to vector<2x32xf32>
    %465 = arith.mulf %464, %463 : vector<2x32xf32>
    %466 = vector.extract_strided_slice %455 {offsets = [0, 64], sizes = [2, 32], strides = [1, 1]} : vector<2x128xf32> to vector<2x32xf32>
    %467 = vector.extract_strided_slice %455 {offsets = [0, 96], sizes = [2, 32], strides = [1, 1]} : vector<2x128xf32> to vector<2x32xf32>
    %cst_218 = arith.constant 1.000000e+00 : f32
    %468 = vector.broadcast %cst_218 : f32 to vector<2x32xf32>
    %469 = arith.addf %467, %468 : vector<2x32xf32>
    %cst_219 = arith.constant 5.000000e-01 : f32
    %470 = vector.broadcast %cst_219 : f32 to vector<2x32xf32>
    %471 = arith.mulf %470, %469 : vector<2x32xf32>
    %472 = arith.mulf %465, %448 : vector<2x32xf32>
    %473 = arith.mulf %460, %466 : vector<2x32xf32>
    %474 = arith.addf %472, %473 : vector<2x32xf32>
    %475 = math.tanh %474 : vector<2x32xf32>
    %476 = arith.mulf %471, %475 : vector<2x32xf32>
    %c1_220 = arith.constant 1 : index
    %c0_221 = arith.constant 0 : index
    %c0_222 = arith.constant 0 : index
    %477 = vector.load %arg10[%c1_220, %c0_221, %c0_222] : memref<2x2x32xf32, #tpu.memory_space<vmem>>, vector<1x2x32xf32>
    %478 = vector.shape_cast %477 : vector<1x2x32xf32> to vector<2x32xf32>
    %479 = vector.shape_cast %476 : vector<2x32xf32> to vector<1x2x32xf32>
    tpu.vector_store %arg10[%c1_220, %c0_221, %c0_222], %479 {strides = array<i32>} : memref<2x2x32xf32, #tpu.memory_space<vmem>>, vector<1x2x32xf32>,
    %c1_223 = arith.constant 1 : index
    %c0_224 = arith.constant 0 : index
    %c0_225 = arith.constant 0 : index
    %480 = vector.load %arg11[%c1_223, %c0_224, %c0_225] : memref<2x2x32xf32, #tpu.memory_space<vmem>>, vector<1x2x32xf32>
    %481 = vector.shape_cast %480 : vector<1x2x32xf32> to vector<2x32xf32>
    %482 = vector.shape_cast %474 : vector<2x32xf32> to vector<1x2x32xf32>
    tpu.vector_store %arg11[%c1_223, %c0_224, %c0_225], %482 {strides = array<i32>} : memref<2x2x32xf32, #tpu.memory_space<vmem>>, vector<1x2x32xf32>,
    %483 = tpu.concatenate %294, %320, %346, %372, %398, %424, %450, %476 in 1 : vector<2x32xf32>, vector<2x32xf32>, vector<2x32xf32>, vector<2x32xf32>, vector<2x32xf32>, vector<2x32xf32>, vector<2x32xf32>, vector<2x32xf32> -> vector<2x256xf32>
    %c0_226 = arith.constant 0 : index
    %c0_227 = arith.constant 0 : index
    %484 = vector.load %arg9[%c0_226, %c0_227] : memref<2x256xf32, #tpu.memory_space<vmem>>, vector<2x256xf32>
    tpu.vector_store %arg9[%c0_226, %c0_227], %483 {strides = array<i32>} : memref<2x256xf32, #tpu.memory_space<vmem>>, vector<2x256xf32>,
    return
  }
  func.func @transform_0(%arg0: i32, %arg1: i32) -> (i32, i32, i32) {
    %c0_i32 = arith.constant 0 : i32
    %c0_i32_0 = arith.constant 0 : i32
    return %arg0, %arg1, %c0_i32 : i32, i32, i32
  }
  func.func @transform_1(%arg0: i32, %arg1: i32) -> (i32, i32) {
    %c0_i32 = arith.constant 0 : i32
    %c0_i32_0 = arith.constant 0 : i32
    %c0_i32_1 = arith.constant 0 : i32
    return %c0_i32, %c0_i32_0 : i32, i32
  }
  func.func @transform_2(%arg0: i32, %arg1: i32) -> (i32, i32) {
    %c0_i32 = arith.constant 0 : i32
    %c0_i32_0 = arith.constant 0 : i32
    %c0_i32_1 = arith.constant 0 : i32
    return %c0_i32, %c0_i32_0 : i32, i32
  }
  func.func @transform_3(%arg0: i32, %arg1: i32) -> (i32, i32) {
    %c0_i32 = arith.constant 0 : i32
    %c0_i32_0 = arith.constant 0 : i32
    %c0_i32_1 = arith.constant 0 : i32
    return %c0_i32, %c0_i32_0 : i32, i32
  }
  func.func @transform_4(%arg0: i32, %arg1: i32) -> (i32, i32) {
    %c0_i32 = arith.constant 0 : i32
    %c0_i32_0 = arith.constant 0 : i32
    %c0_i32_1 = arith.constant 0 : i32
    return %c0_i32, %c0_i32_0 : i32, i32
  }
  func.func @transform_5(%arg0: i32, %arg1: i32) -> (i32, i32) {
    %c0_i32 = arith.constant 0 : i32
    %c0_i32_0 = arith.constant 0 : i32
    %c0_i32_1 = arith.constant 0 : i32
    return %c0_i32, %c0_i32_0 : i32, i32
  }
  func.func @transform_6(%arg0: i32, %arg1: i32) -> (i32, i32) {
    %c0_i32 = arith.constant 0 : i32
    %c0_i32_0 = arith.constant 0 : i32
    %c0_i32_1 = arith.constant 0 : i32
    return %c0_i32, %c0_i32_0 : i32, i32
  }
  func.func @transform_7(%arg0: i32, %arg1: i32) -> (i32, i32) {
    %c0_i32 = arith.constant 0 : i32
    return %arg0, %arg1 : i32, i32
  }
}

</mosaic_0001>

<bundles_post_ra>
// kernel: tpu_custom_call.1
= control target key start
LH: loop header
LB: loop body
LE: loop exit
PB: predicated region body
PF: predicated region fallthrough
CT: control target
= control target key end

     0   :  { %12 = vsyncpa [#allocation7], 0  ;;  %s3726_s0 = inlined_call_operand.hbm [shape: f32[2,8,16], index: 0, kind: input, shape index: {}]   ;;  %s3727_s1 = inlined_call_operand.hbm [shape: f32[16,128], index: 1, kind: input, shape index: {}]   ;;  %s3728_s2 = inlined_call_operand.hbm [shape: f32[32,128], index: 2, kind: input, shape index: {}]   ;;  %s3729_s3 = inlined_call_operand.vmem [shape: f32[1,128], index: 3, kind: input, shape index: {}]   ;;  %s3730_s4 = inlined_call_operand.hbm [shape: f32[32,128], index: 4, kind: input, shape index: {}]   ;;  %s3731_s5 = inlined_call_operand.hbm [shape: f32[32,128], index: 5, kind: input, shape index: {}]   ;;  %s3732_s6 = inlined_call_operand.vmem [shape: f32[1,128], index: 6, kind: input, shape index: {}]   ;;  %s3733_s7 = inlined_call_operand.hbm [shape: f32[2,256], index: 7, kind: output, shape index: {}]  }
   0x1   :  { %13 = vsyncpa [#allocation10], 0 }
   0x2   :  { %14 = vsyncpa [#allocation13], 0 }
   0x3   :  { %15 = vsyncpa [#allocation8], 0  ;;  %s3181_s24 = smov [#allocation9]   ;;  %s3182_s26 = smov [#allocation12]  }
   0x4   :  { %s33_s25 = sshll.u32 %s3181_s24, 4  ;;  %s59_s27 = sshll.u32 %s3182_s26, 4  ;;  %s34_s25 = int_to_ptr.vmem [resolvable:$true] %s33_s25  ;;  %s3235_s27 = int_to_ptr.vmem [resolvable:$true] %s59_s27 }
   0x5   :  { %s3041_s30 = scalar_lea.hbm %s3727_s1, 256 }
   0x6   :  { %p3042_p0 = scmp.ne.s32.totalorder %s3727_s1, %s3041_s30  ;;  %p3045_p1 = scmp.lt.u32.totalorder %s3041_s30, %s3727_s1 }
   0x8   :  { %p3047_p2 = pnand %p3045_p1, %p3042_p0 }
   0xa   :  { %3050 = shalt.err (!%p3047_p2)
}
   0xb   :  { %s3051_s12 = scalar_lea.vmem %s34_s25, 256  ;;  %p3056_p4 = scmp.lt.s32.totalorder %s34_s25, %s34_s25 }
   0xc   :  { %p3052_p3 = scmp.ne.s32.totalorder %s34_s25, %s3051_s12  ;;  %p3057_p5 = scmp.lt.s32.totalorder %s3051_s12, %s3051_s12 }
   0xe   :  { %p3058_p6 = por %p3057_p5, %p3056_p4 }
  0x10   :  { %p3059_p7 = pnand %p3058_p6, %p3052_p3 }
  0x12   :  { %3062 = shalt.err (!%p3059_p7)
}
  0x13   :  { %s3183_s13 = smov 128   ;;  %s3184_s14 = smov 8  }
  0x14   :  { %39 = dma.hbm_to_vmem [thread:$0]  %s3727_s1, 256, %s34_s25, [#allocation10], %s3183_s13, %s3183_s13, %s3184_s14  }
  0x15   :  { %s3063_s19 = scalar_lea.hbm %s3730_s4, 512 }
  0x16   :  { %p3064_p8 = scmp.ne.s32.totalorder %s3730_s4, %s3063_s19  ;;  %p3067_p9 = scmp.lt.u32.totalorder %s3063_s19, %s3730_s4 }
  0x18   :  { %p3069_p10 = pnand %p3067_p9, %p3064_p8 }
  0x1a   :  { %3072 = shalt.err (!%p3069_p10)
}
  0x1b   :  { %s3073_s24 = scalar_lea.vmem %s3235_s27, 512  ;;  %p3078_p12 = scmp.lt.s32.totalorder %s3235_s27, %s3235_s27 }
  0x1c   :  { %p3074_p11 = scmp.ne.s32.totalorder %s3235_s27, %s3073_s24  ;;  %p3079_p13 = scmp.lt.s32.totalorder %s3073_s24, %s3073_s24 }
  0x1e   :  { %p3080_p0 = por %p3079_p13, %p3078_p12 }
  0x20   :  { %p3081_p1 = pnand %p3080_p0, %p3074_p11 }
  0x22   :  { %3084 = shalt.err (!%p3081_p1)
}
  0x23   :  { %65 = dma.hbm_to_vmem [thread:$0]  %s3730_s4, 512, %s3235_s27, [#allocation13], %s3183_s13, %s3183_s13, %s3184_s14  }
  0x24   :  { %s3185_s26 = smov [#allocation6]   ;;  %s3186_s29 = smov [#allocation11]  }
  0x25   :  { %s21_s28 = sshll.u32 %s3185_s26, 4  ;;  %s45_s30 = sshll.u32 %s3186_s29, 4  ;;  %s22_s28 = int_to_ptr.vmem [resolvable:$true] %s21_s28  ;;  %s3272_s30 = int_to_ptr.vmem [resolvable:$true] %s45_s30 }
  0x26   :  { %s3085_s10 = scalar_lea.hbm %s3726_s0, 256 }
  0x27   :  { %p3086_p2 = scmp.ne.s32.totalorder %s3726_s0, %s3085_s10  ;;  %p3089_p3 = scmp.lt.u32.totalorder %s3085_s10, %s3726_s0 }
  0x29   :  { %p3091_p4 = pnand %p3089_p3, %p3086_p2 }
  0x2b   :  { %3094 = shalt.err (!%p3091_p4)
}
  0x2c   :  { %s3095_s4 = scalar_lea.vmem %s22_s28, 256  ;;  %p3100_p6 = scmp.lt.s32.totalorder %s22_s28, %s22_s28 }
  0x2d   :  { %p3096_p5 = scmp.ne.s32.totalorder %s22_s28, %s3095_s4  ;;  %p3101_p7 = scmp.lt.s32.totalorder %s3095_s4, %s3095_s4 }
  0x2f   :  { %p3102_p8 = por %p3101_p7, %p3100_p6 }
  0x31   :  { %p3103_p9 = pnand %p3102_p8, %p3096_p5 }
  0x33   :  { %3106 = shalt.err (!%p3103_p9)
}
  0x34   :  { %27 = dma.hbm_to_vmem [thread:$0]  %s3726_s0, 256, %s22_s28, [#allocation7], %s3183_s13, %s3183_s13, %s3184_s14  }
  0x35   :  { %s3107_s20 = scalar_lea.hbm %s3728_s2, 512 }
  0x36   :  { %p3108_p10 = scmp.ne.s32.totalorder %s3728_s2, %s3107_s20  ;;  %p3111_p11 = scmp.lt.u32.totalorder %s3107_s20, %s3728_s2 }
  0x38   :  { %p3113_p12 = pnand %p3111_p11, %p3108_p10 }
  0x3a   :  { %3116 = shalt.err (!%p3113_p12)
}
  0x3b   :  { %s3117_s1 = scalar_lea.vmem %s3272_s30, 512  ;;  %p3122_p0 = scmp.lt.s32.totalorder %s3272_s30, %s3272_s30 }
  0x3c   :  { %p3118_p13 = scmp.ne.s32.totalorder %s3272_s30, %s3117_s1  ;;  %p3123_p1 = scmp.lt.s32.totalorder %s3117_s1, %s3117_s1 }
  0x3e   :  { %p3124_p2 = por %p3123_p1, %p3122_p0 }
  0x40   :  { %p3125_p3 = pnand %p3124_p2, %p3118_p13 }
  0x42   :  { %3128 = shalt.err (!%p3125_p3)
}
  0x43   :  { %51 = dma.hbm_to_vmem [thread:$0]  %s3728_s2, 512, %s3272_s30, [#allocation10], %s3183_s13, %s3183_s13, %s3184_s14  }
  0x44   :  { %s3187_s26 = smov [#allocation14]   ;;  %s3129_s9 = scalar_lea.hbm %s3731_s5, 512 }
  0x45   :  { %s71_s28 = sshll.u32 %s3187_s26, 4  ;;  %p3130_p4 = scmp.ne.s32.totalorder %s3731_s5, %s3129_s9  ;;  %s72_s28 = int_to_ptr.vmem [resolvable:$true] %s71_s28 }
  0x46   :  { %p3133_p5 = scmp.lt.u32.totalorder %s3129_s9, %s3731_s5 }
  0x48   :  { %p3135_p6 = pnand %p3133_p5, %p3130_p4 }
  0x4a   :  { %3138 = shalt.err (!%p3135_p6)
}
  0x4b   :  { %s3139_s16 = scalar_lea.vmem %s72_s28, 512  ;;  %p3144_p8 = scmp.lt.s32.totalorder %s72_s28, %s72_s28 }
  0x4c   :  { %p3140_p7 = scmp.ne.s32.totalorder %s72_s28, %s3139_s16  ;;  %p3145_p9 = scmp.lt.s32.totalorder %s3139_s16, %s3139_s16 }
  0x4e   :  { %p3146_p10 = por %p3145_p9, %p3144_p8 }
  0x50   :  { %p3147_p11 = pnand %p3146_p10, %p3140_p7 }
  0x52   :  { %3150 = shalt.err (!%p3147_p11)
}
  0x53   :  { %77 = dma.hbm_to_vmem [thread:$0]  %s3731_s5, 512, %s72_s28, [#allocation13], %s3183_s13, %s3183_s13, %s3184_s14  }
  0x54   :  { %3173 = dma.done.wait [#allocation7], 256  }
  0x55   :  { %3174 = vsyncadd [#allocation7], 4294967040 }
  0x56   :  { %3175 = dma.done.wait [#allocation10], 768  }
  0x57   :  { %3176 = vsyncadd [#allocation10], 4294966528 }
  0x58   :  { %3177 = dma.done.wait [#allocation13], 1024  }
  0x59   :  { %3178 = vsyncadd [#allocation13], 4294966272  ;;  %v3188_v0 = vmov 0.0|0.0   ;;  %vm3189_vm0 = vmmov 0   ;;  %v3190_v1 = vmov 0.0   ;;  %vm99_vm1 = vcmask 254976  }
  0x5a   :  { %2795 = vmatprep.subr.bf16.mxu1 %v3188_v0  ;;  %2612 = vmatprep.mubr.msk.f32.mxu1 %vm3189_vm0, %v3190_v1  ;;  %100 = vst.msk [vmem:[#allocation2] sm:$0x3] %vm99_vm1, %v3190_v1  ;;  %101 = vst.msk [vmem:[#allocation2 + $0x2] sm:$0x3] %vm99_vm1, %v3190_v1  ;;  %vm119_vm2 = vcmask 130048   ;;  %v104_v2 = vld [vmem:[#allocation9] sm:$0xff] }
  0x5b   :  { %102 = vst.msk [vmem:[#allocation3] sm:$0x3] %vm99_vm1, %v3190_v1  ;;  %103 = vst.msk [vmem:[#allocation3 + $0x2] sm:$0x3] %vm99_vm1, %v3190_v1  ;;  %v105_v3 = vld [vmem:[#allocation9 + $0x8] sm:$0xff]  ;;  %v111_v4 = vld [vmem:[#allocation6] sm:$0xff] }
  0x5c   :  { %v2791_v5 = vpack.c.bf16 %v105_v3, %v104_v2  ;;  %2601 = vmatprep.mubr.msk.f32.mxu0 %vm119_vm2, %v111_v4  ;;  %v106_v6 = vld [vmem:[#allocation11] sm:$0xff]  ;;  %v107_v7 = vld [vmem:[#allocation11 + $0x8] sm:$0xff]  ;;  %v108_v9 = vld [vmem:[#allocation11 + $0x10] sm:$0xff]  ;;  %s3191_s5 = smov 32   ;;  %vm207_vm3 = vcmask 261120   ;;  %s3192_s4 = smov 64  }
  0x5d   :  { %v3336_v8 = vpack.c.bf16 %v107_v7, %v106_v6  ;;  %v109_v10 = vld [vmem:[#allocation11 + $0x18] sm:$0xff]  ;;  %v112_v12 = vld [vmem:[#allocation6 + $0x8] sm:$0xff]  ;;  %vm349_vm4 = vcmask 1041409   ;;  %vm343_vm5 = vcmask 253952   ;;  %vm2448_vm6 = vcmask 523264   ;;  %s3194_s17 = smov [#allocation15]  }
  0x5e   :  { %2792 = vmatprep.subr.bf16.mxu0 %v2791_v5  ;;  %v3339_v13 = vpack.c.bf16 %v109_v10, %v108_v9  ;;  %v2484_v16 = vld [vmem:[%s3729_s3] ss:$0 sm:$0xff]  ;;  %vm2450_vm7 = vcmask 785408   ;;  %s2473_s18 = sshll.u32 %s3194_s17, 4  ;;  %s2474_s18 = int_to_ptr.vmem [resolvable:$true] %s2473_s18 }
  0x5f   :  { %2794 = vmatpush3.bf16.msra.mxu0 %v2791_v5  ;;  %2797 = vmatpush3.bf16.msra.mxu1 %v3336_v8  ;;  %s3151_s19 = scalar_lea.vmem %s2474_s18, 64  ;;  %p3156_p13 = scmp.lt.s32.totalorder %s2474_s18, %s2474_s18 }
  0x60   :  { %2798 = vmatprep.subr.bf16.mxu1 %v3188_v0  ;;  %2801 = vmatprep.subr.bf16.mxu0 %v3188_v0  ;;  %p3152_p12 = scmp.ne.s32.totalorder %s2474_s18, %s3151_s19  ;;  %p3157_p0 = scmp.lt.s32.totalorder %s3151_s19, %s3151_s19 }
  0x61   :  { %v203_v15 = vld [vmem:[#allocation2] sm:$0x3] }
  0x62   :  { %v204_v11 = vld [vmem:[#allocation3] sm:$0x3]  ;;  %2602 = vmatmul.mubr.msk.f32.vlgmr.msra.gmra.mrb[0].mxu0 %vm119_vm2, %v112_v12  ;;  %p3158_p1 = por %p3157_p0, %p3156_p13 }
  0x63   :  { %v294_v14 = vrot.slane %v204_v11, 1  ;;  %2800 = vmatpush3.bf16.msra.mxu1 %v3339_v13  ;;  %2803 = vmatpush3.bf16.msra.mxu0 %v3336_v8 }
  0x64   :  { %2804 = vmatprep.subr.bf16.mxu0 %v3188_v0  ;;  %2623 = vmatprep.mubr.msk.f32.mxu0 %vm3189_vm0, %v3190_v1  ;;  %p3159_p2 = pnand %p3158_p1, %p3152_p12 }
  0x65   :  { %297 = vrot.lane.b32.xlu1 %v294_v14, %s3191_s5  ;;  %2807 = vmatprep.subr.bf16.mxu1 %v3188_v0 }
  0x66   :  { %2613 = vmatmul.mubr.msk.f32.vlgmr.msra.gmra.mrb[0].mxu1 %vm207_vm3, %v203_v15 }
  0x67   :  { %2806 = vmatpush3.bf16.msra.mxu0 %v3339_v13  ;;  %2809 = vmatpush3.bf16.msra.mxu1 %v3336_v8 }
  0x68   :  { %2810 = vmatprep.subr.bf16.mxu1 %v3188_v0  ;;  %2634 = vmatprep.mubr.msk.f32.mxu1 %vm3189_vm0, %v3190_v1 }
  0x69   :  { %295 = vrot.lane.b32.xlu1 %v204_v11, %s3191_s5  ;;  %2813 = vmatprep.subr.bf16.mxu0 %v3188_v0 }
  0x6b   :  { %2812 = vmatpush3.bf16.msra.mxu1 %v3339_v13 }
  0x6c   :  { %2819 = vmatprep.subr.bf16.mxu1 %v3188_v0 }
  0xd7   :  { %v298_v38 = vpop.permute.xlu1 %297 }
  0xdb   :  { %v296_v40 = vpop.permute.xlu1 %295 }
 0x135   :  { %v2603_v17 = vpop.f32.mrb[0].mxu0 }
 0x136   :  { %v198_v18 = vadd.f32 %v2603_v17, %v2484_v16  ;;  %v192_v19 = vpop.f32.mrb[1].mxu0 }
 0x137   :  { %v193_v20 = vadd.f32 %v2484_v16, %v192_v19 }
 0x138   :  { %202 = vst [vmem:[#allocation4 + $0x8] sm:$0xff] %v198_v18 }
 0x139   :  { %201 = vst [vmem:[#allocation4] sm:$0xff] %v193_v20  ;;  %v277_v21 = vpop.f32.mrb[0].mxu1 }
 0x13a   :  { %v2614_v22 = vpop.f32.mrb[1].mxu1  ;;  %v282_v23 = vrot.slane %v277_v21, 1 }
 0x13f   :  { %v206_v24 = vld [vmem:[#allocation4 + $0x8] sm:$0x1]  ;;  %v347_v60 = vld [vmem:[#allocation4 + $0x9] sm:$0x1] }
 0x140   :  { %v205_v25 = vld [vmem:[#allocation4] sm:$0x1]  ;;  %v286_v26 = vadd.f32 %v282_v23, %v206_v24  ;;  %v346_v55 = vld [vmem:[#allocation4 + $0x1] sm:$0x1] }
 0x141   :  { %v285_v27 = vadd.f32 %v277_v21, %v205_v25 }
 0x142   :  { %2913 = vtanh.f32 %v286_v26 }
 0x143   :  { %2915 = vtanh.f32 %v285_v27  ;;  %v481_v27 = vld [vmem:[#allocation4 + $0x2] sm:$0x1] }
 0x14c   :  { %v2914_v28 = vpop.eup %2913 }
 0x14d   :  { %307 = vrot.lane.b32.xlu0 %v2914_v28, %s3192_s4  ;;  %v2916_v29 = vpop.eup %2915  ;;  %v290_v30 = vadd.f32 1.0, %v2914_v28 }
 0x14e   :  { %v289_v32 = vadd.f32 1.0, %v2916_v29 }
 0x14f   :  { %v292_v31 = vmul.f32 0.5, %v290_v30 }
 0x150   :  { %v291_v35 = vmul.f32 0.5, %v289_v32  ;;  %v482_v32 = vld [vmem:[#allocation4 + $0xa] sm:$0x1] }
 0x151   :  { %305 = vrot.lane.b32.xlu0 %v2916_v29, %s3192_s4  ;;  %v302_v39 = vmul.f32 %v298_v38, %v292_v31 }
 0x152   :  { %v301_v43 = vmul.f32 %v296_v40, %v291_v35 }
 0x1bf   :  { %v308_v33 = vpop.permute.xlu0 %307 }
 0x1c0   :  { %v312_v34 = vmul.f32 %v308_v33, %v292_v31 }
 0x1c2   :  { %317 = vrot.lane.b32.xlu0 %v312_v34, %s3191_s5 }
 0x1c3   :  { %v306_v36 = vpop.permute.xlu0 %305 }
 0x1c4   :  { %v311_v37 = vmul.f32 %v306_v36, %v291_v35 }
 0x1c6   :  { %315 = vrot.lane.b32.xlu1 %v311_v37, %s3191_s5 }
 0x234   :  { %v318_v41 = vpop.permute.xlu0 %317 }
 0x235   :  { %v322_v42 = vadd.f32 %v318_v41, %v302_v39 }
 0x237   :  { %2917 = vtanh.f32 %v322_v42 }
 0x238   :  { %v316_v44 = vpop.permute.xlu1 %315 }
 0x239   :  { %v321_v45 = vadd.f32 %v316_v44, %v301_v43 }
 0x23b   :  { %2919 = vtanh.f32 %v321_v45 }
 0x241   :  { %v2918_v46 = vpop.eup %2917 }
 0x242   :  { %329 = vrot.lane.b32.xlu0 %v2918_v46, %s3192_s4 }
 0x245   :  { %v2920_v47 = vpop.eup %2919 }
 0x246   :  { %327 = vrot.lane.b32.xlu1 %v2920_v47, %s3192_s4 }
 0x2b4   :  { %v330_v48 = vpop.permute.xlu0 %329 }
 0x2b5   :  { %v3370_v49 = vmul.f32 %v330_v48, %v292_v31 }
 0x2b7   :  { %v348_v51 = vrot.slane %v3370_v49, 7 }
 0x2b8   :  { %v328_v50 = vpop.permute.xlu1 %327 }
 0x2b9   :  { %v3373_v52 = vmul.f32 %v328_v50, %v291_v35 }
 0x2bb   :  { %v350_v53 = vsel %vm349_vm4, %v348_v51, %v3373_v52 }
 0x2bc   :  { %351 = vrot.lane.b32.xlu0 %v350_v53, %s3191_s5 }
 0x32e   :  { %v352_v54 = vpop.permute.xlu0 %351 }
 0x32f   :  { %2624 = vmatmul.mubr.msk.f32.vlgmr.msra.gmra.mrb[2].mxu0 %vm207_vm3, %v352_v54 }
 0x330   :  { %2815 = vmatpush3.bf16.msra.mxu0 %v3336_v8  ;;  %2645 = vmatprep.mubr.msk.f32.mxu0 %vm3189_vm0, %v3190_v1 }
 0x331   :  { %2816 = vmatprep.subr.bf16.mxu0 %v3188_v0 }
 0x334   :  { %2818 = vmatpush3.bf16.msra.mxu0 %v3339_v13 }
 0x335   :  { %2825 = vmatprep.subr.bf16.mxu0 %v3188_v0 }
 0x402   :  { %v421_v56 = vpop.f32.mrb[2].mxu0 }
 0x403   :  { %v426_v57 = vrot.slane %v421_v56, 1  ;;  %v429_v58 = vadd.f32 %v421_v56, %v346_v55  ;;  %v2625_v59 = vpop.f32.mrb[3].mxu0 }
 0x405   :  { %v430_v61 = vadd.f32 %v426_v57, %v347_v60  ;;  %2921 = vtanh.f32 %v429_v58 }
 0x407   :  { %2923 = vtanh.f32 %v430_v61  ;;  %v615_v61 = vld [vmem:[#allocation4 + $0x3] sm:$0x1] }
 0x40f   :  { %v2922_v62 = vpop.eup %2921 }
 0x410   :  { %441 = vrot.lane.b32.xlu0 %v2922_v62, %s3192_s4  ;;  %v433_v2 = vadd.f32 1.0, %v2922_v62 }
 0x411   :  { %v2924_v63 = vpop.eup %2923 }
 0x412   :  { %443 = vrot.lane.b32.xlu1 %v2924_v63, %s3192_s4  ;;  %v434_v3 = vadd.f32 1.0, %v2924_v63  ;;  %v435_v4 = vmul.f32 0.5, %v433_v2 }
 0x414   :  { %v436_v7 = vmul.f32 0.5, %v434_v3  ;;  %v437_v11 = vmul.f32 %v435_v4, %v321_v45 }
 0x416   :  { %v438_v15 = vmul.f32 %v436_v7, %v322_v42 }
 0x482   :  { %v442_v5 = vpop.permute.xlu0 %441 }
 0x483   :  { %v447_v6 = vmul.f32 %v442_v5, %v435_v4 }
 0x484   :  { %v444_v9 = vpop.permute.xlu1 %443 }
 0x485   :  { %v448_v10 = vmul.f32 %v444_v9, %v436_v7  ;;  %451 = vrot.lane.b32.xlu0 %v447_v6, %s3191_s5 }
 0x487   :  { %453 = vrot.lane.b32.xlu1 %v448_v10, %s3191_s5 }
 0x4f7   :  { %v452_v12 = vpop.permute.xlu0 %451 }
 0x4f8   :  { %v457_v14 = vadd.f32 %v452_v12, %v437_v11 }
 0x4f9   :  { %v454_v16 = vpop.permute.xlu1 %453 }
 0x4fa   :  { %2925 = vtanh.f32 %v457_v14  ;;  %v458_v17 = vadd.f32 %v454_v16, %v438_v15 }
 0x4fc   :  { %2927 = vtanh.f32 %v458_v17 }
 0x504   :  { %v2926_v18 = vpop.eup %2925 }
 0x505   :  { %463 = vrot.lane.b32.xlu0 %v2926_v18, %s3192_s4 }
 0x506   :  { %v2928_v19 = vpop.eup %2927 }
 0x507   :  { %465 = vrot.lane.b32.xlu1 %v2928_v19, %s3192_s4 }
 0x577   :  { %v464_v20 = vpop.permute.xlu0 %463 }
 0x578   :  { %v3393_v23 = vmul.f32 %v464_v20, %v435_v4  ;;  %v616_v4 = vld [vmem:[#allocation4 + $0xb] sm:$0x1] }
 0x579   :  { %v466_v21 = vpop.permute.xlu1 %465 }
 0x57a   :  { %v3391_v22 = vmul.f32 %v466_v21, %v436_v7 }
 0x57c   :  { %v483_v24 = vrot.slane %v3391_v22, 7 }
 0x57e   :  { %v484_v25 = vsel %vm349_vm4, %v483_v24, %v3393_v23 }
 0x57f   :  { %485 = vrot.lane.b32.xlu1 %v484_v25, %s3191_s5 }
 0x5f1   :  { %v486_v26 = vpop.permute.xlu1 %485 }
 0x5f2   :  { %2635 = vmatmul.mubr.msk.f32.vlgmr.msra.gmra.mrb[2].mxu1 %vm207_vm3, %v486_v26 }
 0x5f3   :  { %2821 = vmatpush3.bf16.msra.mxu1 %v3336_v8  ;;  %2656 = vmatprep.mubr.msk.f32.mxu1 %vm3189_vm0, %v3190_v1 }
 0x5f4   :  { %2822 = vmatprep.subr.bf16.mxu1 %v3188_v0 }
 0x5f7   :  { %2824 = vmatpush3.bf16.msra.mxu1 %v3339_v13 }
 0x5f8   :  { %2831 = vmatprep.subr.bf16.mxu1 %v3188_v0 }
 0x6c5   :  { %v555_v28 = vpop.f32.mrb[2].mxu1 }
 0x6c6   :  { %v560_v29 = vrot.slane %v555_v28, 1  ;;  %v563_v30 = vadd.f32 %v555_v28, %v481_v27  ;;  %v2636_v31 = vpop.f32.mrb[3].mxu1 }
 0x6c8   :  { %v564_v33 = vadd.f32 %v560_v29, %v482_v32  ;;  %2929 = vtanh.f32 %v563_v30 }
 0x6ca   :  { %2931 = vtanh.f32 %v564_v33 }
 0x6d2   :  { %v2930_v34 = vpop.eup %2929 }
 0x6d3   :  { %575 = vrot.lane.b32.xlu1 %v2930_v34, %s3192_s4  ;;  %v567_v36 = vadd.f32 1.0, %v2930_v34 }
 0x6d4   :  { %v2932_v35 = vpop.eup %2931 }
 0x6d5   :  { %577 = vrot.lane.b32.xlu0 %v2932_v35, %s3192_s4  ;;  %v568_v37 = vadd.f32 1.0, %v2932_v35  ;;  %v569_v38 = vmul.f32 0.5, %v567_v36  ;;  %v749_v35 = vld [vmem:[#allocation4 + $0x4] sm:$0x1] }
 0x6d7   :  { %v570_v41 = vmul.f32 0.5, %v568_v37  ;;  %v571_v44 = vmul.f32 %v569_v38, %v457_v14 }
 0x6d9   :  { %v572_v47 = vmul.f32 %v570_v41, %v458_v17 }
 0x745   :  { %v576_v39 = vpop.permute.xlu1 %575 }
 0x746   :  { %v581_v40 = vmul.f32 %v576_v39, %v569_v38 }
 0x747   :  { %v578_v42 = vpop.permute.xlu0 %577 }
 0x748   :  { %v582_v43 = vmul.f32 %v578_v42, %v570_v41  ;;  %585 = vrot.lane.b32.xlu1 %v581_v40, %s3191_s5  ;;  %v750_v40 = vld [vmem:[#allocation4 + $0xc] sm:$0x1] }
 0x74a   :  { %587 = vrot.lane.b32.xlu0 %v582_v43, %s3191_s5 }
 0x7ba   :  { %v586_v45 = vpop.permute.xlu1 %585 }
 0x7bb   :  { %v591_v46 = vadd.f32 %v586_v45, %v571_v44 }
 0x7bc   :  { %v588_v48 = vpop.permute.xlu0 %587 }
 0x7bd   :  { %2933 = vtanh.f32 %v591_v46  ;;  %v592_v50 = vadd.f32 %v588_v48, %v572_v47 }
 0x7bf   :  { %2935 = vtanh.f32 %v592_v50 }
 0x7c7   :  { %v2934_v51 = vpop.eup %2933 }
 0x7c8   :  { %597 = vrot.lane.b32.xlu1 %v2934_v51, %s3192_s4 }
 0x7c9   :  { %v2936_v53 = vpop.eup %2935 }
 0x7ca   :  { %599 = vrot.lane.b32.xlu0 %v2936_v53, %s3192_s4 }
 0x83a   :  { %v598_v54 = vpop.permute.xlu1 %597 }
 0x83b   :  { %v3414_v57 = vmul.f32 %v598_v54, %v569_v38 }
 0x83c   :  { %v600_v55 = vpop.permute.xlu0 %599 }
 0x83d   :  { %v3412_v56 = vmul.f32 %v600_v55, %v570_v41 }
 0x83f   :  { %v617_v58 = vrot.slane %v3412_v56, 7 }
 0x841   :  { %v618_v59 = vsel %vm349_vm4, %v617_v58, %v3414_v57 }
 0x842   :  { %619 = vrot.lane.b32.xlu0 %v618_v59, %s3191_s5 }
 0x8b4   :  { %v620_v60 = vpop.permute.xlu0 %619 }
 0x8b5   :  { %2646 = vmatmul.mubr.msk.f32.vlgmr.msra.gmra.mrb[4].mxu0 %vm207_vm3, %v620_v60 }
 0x8b6   :  { %2827 = vmatpush3.bf16.msra.mxu0 %v3336_v8  ;;  %2667 = vmatprep.mubr.msk.f32.mxu0 %vm3189_vm0, %v3190_v1 }
 0x8b7   :  { %2828 = vmatprep.subr.bf16.mxu0 %v3188_v0 }
 0x8ba   :  { %2830 = vmatpush3.bf16.msra.mxu0 %v3339_v13 }
 0x8bb   :  { %2837 = vmatprep.subr.bf16.mxu0 %v3188_v0 }
 0x988   :  { %v689_v62 = vpop.f32.mrb[4].mxu0 }
 0x989   :  { %v694_v63 = vrot.slane %v689_v62, 1  ;;  %v697_v2 = vadd.f32 %v689_v62, %v615_v61  ;;  %v2647_v3 = vpop.f32.mrb[5].mxu0 }
 0x98b   :  { %v698_v5 = vadd.f32 %v694_v63, %v616_v4  ;;  %2937 = vtanh.f32 %v697_v2 }
 0x98d   :  { %2939 = vtanh.f32 %v698_v5 }
 0x995   :  { %v2938_v6 = vpop.eup %2937 }
 0x996   :  { %709 = vrot.lane.b32.xlu0 %v2938_v6, %s3192_s4  ;;  %v701_v9 = vadd.f32 1.0, %v2938_v6 }
 0x997   :  { %v2940_v7 = vpop.eup %2939 }
 0x998   :  { %711 = vrot.lane.b32.xlu1 %v2940_v7, %s3192_s4  ;;  %v702_v10 = vadd.f32 1.0, %v2940_v7  ;;  %v703_v11 = vmul.f32 0.5, %v701_v9 }
 0x99a   :  { %v704_v15 = vmul.f32 0.5, %v702_v10  ;;  %v705_v18 = vmul.f32 %v703_v11, %v591_v46  ;;  %v883_v10 = vld [vmem:[#allocation4 + $0x5] sm:$0x1] }
 0x99c   :  { %v706_v21 = vmul.f32 %v704_v15, %v592_v50 }
 0xa08   :  { %v710_v12 = vpop.permute.xlu0 %709 }
 0xa09   :  { %v715_v14 = vmul.f32 %v710_v12, %v703_v11 }
 0xa0a   :  { %v712_v16 = vpop.permute.xlu1 %711 }
 0xa0b   :  { %v716_v17 = vmul.f32 %v712_v16, %v704_v15  ;;  %719 = vrot.lane.b32.xlu0 %v715_v14, %s3191_s5  ;;  %v884_v16 = vld [vmem:[#allocation4 + $0xd] sm:$0x1] }
 0xa0d   :  { %721 = vrot.lane.b32.xlu1 %v716_v17, %s3191_s5 }
 0xa7d   :  { %v720_v19 = vpop.permute.xlu0 %719 }
 0xa7e   :  { %v725_v20 = vadd.f32 %v720_v19, %v705_v18 }
 0xa7f   :  { %v722_v24 = vpop.permute.xlu1 %721 }
 0xa80   :  { %2941 = vtanh.f32 %v725_v20  ;;  %v726_v25 = vadd.f32 %v722_v24, %v706_v21 }
 0xa82   :  { %2943 = vtanh.f32 %v726_v25 }
 0xa8a   :  { %v2942_v26 = vpop.eup %2941 }
 0xa8b   :  { %731 = vrot.lane.b32.xlu0 %v2942_v26, %s3192_s4 }
 0xa8c   :  { %v2944_v27 = vpop.eup %2943 }
 0xa8d   :  { %733 = vrot.lane.b32.xlu1 %v2944_v27, %s3192_s4 }
 0xafd   :  { %v732_v28 = vpop.permute.xlu0 %731 }
 0xafe   :  { %v3435_v31 = vmul.f32 %v732_v28, %v703_v11 }
 0xaff   :  { %v734_v29 = vpop.permute.xlu1 %733 }
 0xb00   :  { %v3433_v30 = vmul.f32 %v734_v29, %v704_v15 }
 0xb02   :  { %v751_v32 = vrot.slane %v3433_v30, 7 }
 0xb04   :  { %v752_v33 = vsel %vm349_vm4, %v751_v32, %v3435_v31 }
 0xb05   :  { %753 = vrot.lane.b32.xlu1 %v752_v33, %s3191_s5 }
 0xb77   :  { %v754_v34 = vpop.permute.xlu1 %753 }
 0xb78   :  { %2657 = vmatmul.mubr.msk.f32.vlgmr.msra.gmra.mrb[4].mxu1 %vm207_vm3, %v754_v34 }
 0xb79   :  { %2833 = vmatpush3.bf16.msra.mxu1 %v3336_v8  ;;  %2678 = vmatprep.mubr.msk.f32.mxu1 %vm3189_vm0, %v3190_v1 }
 0xb7a   :  { %2834 = vmatprep.subr.bf16.mxu1 %v3188_v0 }
 0xb7d   :  { %2836 = vmatpush3.bf16.msra.mxu1 %v3339_v13 }
 0xc4b   :  { %v823_v36 = vpop.f32.mrb[4].mxu1 }
 0xc4c   :  { %v828_v37 = vrot.slane %v823_v36, 1  ;;  %v831_v38 = vadd.f32 %v823_v36, %v749_v35  ;;  %v2658_v39 = vpop.f32.mrb[5].mxu1 }
 0xc4e   :  { %v832_v41 = vadd.f32 %v828_v37, %v750_v40  ;;  %2945 = vtanh.f32 %v831_v38 }
 0xc50   :  { %2947 = vtanh.f32 %v832_v41 }
 0xc58   :  { %v2946_v42 = vpop.eup %2945 }
 0xc59   :  { %843 = vrot.lane.b32.xlu1 %v2946_v42, %s3192_s4  ;;  %v835_v44 = vadd.f32 1.0, %v2946_v42 }
 0xc5a   :  { %v2948_v43 = vpop.eup %2947 }
 0xc5b   :  { %845 = vrot.lane.b32.xlu0 %v2948_v43, %s3192_s4  ;;  %v836_v45 = vadd.f32 1.0, %v2948_v43  ;;  %v837_v46 = vmul.f32 0.5, %v835_v44 }
 0xc5d   :  { %v838_v50 = vmul.f32 0.5, %v836_v45  ;;  %v839_v54 = vmul.f32 %v837_v46, %v725_v20  ;;  %v1017_v45 = vld [vmem:[#allocation4 + $0x6] sm:$0x1] }
 0xc5f   :  { %v840_v59 = vmul.f32 %v838_v50, %v726_v25 }
 0xccb   :  { %v844_v47 = vpop.permute.xlu1 %843 }
 0xccc   :  { %v849_v48 = vmul.f32 %v844_v47, %v837_v46 }
 0xccd   :  { %v846_v51 = vpop.permute.xlu0 %845 }
 0xcce   :  { %v850_v53 = vmul.f32 %v846_v51, %v838_v50  ;;  %853 = vrot.lane.b32.xlu1 %v849_v48, %s3191_s5  ;;  %v1018_v51 = vld [vmem:[#allocation4 + $0xe] sm:$0x1] }
 0xcd0   :  { %855 = vrot.lane.b32.xlu0 %v850_v53, %s3191_s5 }
 0xd40   :  { %v854_v55 = vpop.permute.xlu1 %853 }
 0xd41   :  { %v859_v58 = vadd.f32 %v854_v55, %v839_v54 }
 0xd42   :  { %v856_v60 = vpop.permute.xlu0 %855 }
 0xd43   :  { %2949 = vtanh.f32 %v859_v58  ;;  %v860_v61 = vadd.f32 %v856_v60, %v840_v59 }
 0xd45   :  { %2951 = vtanh.f32 %v860_v61 }
 0xd4d   :  { %v2950_v62 = vpop.eup %2949 }
 0xd4e   :  { %865 = vrot.lane.b32.xlu1 %v2950_v62, %s3192_s4 }
 0xd4f   :  { %v2952_v63 = vpop.eup %2951 }
 0xd50   :  { %867 = vrot.lane.b32.xlu0 %v2952_v63, %s3192_s4 }
 0xdc0   :  { %v866_v2 = vpop.permute.xlu1 %865 }
 0xdc1   :  { %v3455_v5 = vmul.f32 %v866_v2, %v837_v46 }
 0xdc2   :  { %v868_v3 = vpop.permute.xlu0 %867 }
 0xdc3   :  { %v3453_v4 = vmul.f32 %v868_v3, %v838_v50 }
 0xdc5   :  { %v885_v6 = vrot.slane %v3453_v4, 7 }
 0xdc7   :  { %v886_v7 = vsel %vm349_vm4, %v885_v6, %v3455_v5 }
 0xdc8   :  { %887 = vrot.lane.b32.xlu0 %v886_v7, %s3191_s5 }
 0xe3a   :  { %v888_v9 = vpop.permute.xlu0 %887 }
 0xe3b   :  { %2668 = vmatmul.mubr.msk.f32.vlgmr.msra.gmra.mrb[6].mxu0 %vm207_vm3, %v888_v9 }
 0xe3c   :  { %2839 = vmatpush3.bf16.msra.mxu0 %v3336_v8  ;;  %2689 = vmatprep.mubr.msk.f32.mxu0 %vm3189_vm0, %v3190_v1 }
 0xe3d   :  { %2840 = vmatprep.subr.bf16.mxu0 %v3188_v0 }
 0xe40   :  { %2842 = vmatpush3.bf16.msra.mxu0 %v3339_v13 }
 0xe41   :  { %2851 = vmatprep.subr.bf16.mxu0 %v3188_v0 }
 0xf0e   :  { %v957_v11 = vpop.f32.mrb[6].mxu0 }
 0xf0f   :  { %v962_v12 = vrot.slane %v957_v11, 1  ;;  %v965_v14 = vadd.f32 %v957_v11, %v883_v10  ;;  %v2669_v15 = vpop.f32.mrb[7].mxu0 }
 0xf11   :  { %v966_v17 = vadd.f32 %v962_v12, %v884_v16  ;;  %2953 = vtanh.f32 %v965_v14 }
 0xf13   :  { %2955 = vtanh.f32 %v966_v17 }
 0xf1b   :  { %v2954_v18 = vpop.eup %2953 }
 0xf1c   :  { %977 = vrot.lane.b32.xlu0 %v2954_v18, %s3192_s4  ;;  %v969_v19 = vadd.f32 1.0, %v2954_v18 }
 0xf1d   :  { %v2956_v8 = vpop.eup %2955 }
 0xf1e   :  { %979 = vrot.lane.b32.xlu1 %v2956_v8, %s3192_s4  ;;  %v970_v20 = vadd.f32 1.0, %v2956_v8  ;;  %v971_v13 = vmul.f32 0.5, %v969_v19 }
 0xf20   :  { %v972_v25 = vmul.f32 0.5, %v970_v20  ;;  %v973_v28 = vmul.f32 %v971_v13, %v859_v58 }
 0xf22   :  { %v974_v33 = vmul.f32 %v972_v25, %v860_v61 }
 0xf8e   :  { %v978_v21 = vpop.permute.xlu0 %977 }
 0xf8f   :  { %v983_v24 = vmul.f32 %v978_v21, %v971_v13  ;;  %v1151_v21 = vld [vmem:[#allocation4 + $0x7] sm:$0x1] }
 0xf90   :  { %v980_v26 = vpop.permute.xlu1 %979 }
 0xf91   :  { %v984_v27 = vmul.f32 %v980_v26, %v972_v25  ;;  %987 = vrot.lane.b32.xlu0 %v983_v24, %s3191_s5 }
 0xf93   :  { %989 = vrot.lane.b32.xlu1 %v984_v27, %s3191_s5 }
0x1003   :  { %v988_v29 = vpop.permute.xlu0 %987 }
0x1004   :  { %v993_v32 = vadd.f32 %v988_v29, %v973_v28  ;;  %v1152_v28 = vld [vmem:[#allocation4 + $0xf] sm:$0x1] }
0x1005   :  { %v990_v34 = vpop.permute.xlu1 %989 }
0x1006   :  { %2957 = vtanh.f32 %v993_v32  ;;  %v994_v35 = vadd.f32 %v990_v34, %v974_v33 }
0x1008   :  { %2959 = vtanh.f32 %v994_v35 }
0x1010   :  { %v2958_v36 = vpop.eup %2957 }
0x1011   :  { %999 = vrot.lane.b32.xlu0 %v2958_v36, %s3192_s4 }
0x1012   :  { %v2960_v37 = vpop.eup %2959 }
0x1013   :  { %1001 = vrot.lane.b32.xlu1 %v2960_v37, %s3192_s4 }
0x1083   :  { %v1000_v38 = vpop.permute.xlu0 %999 }
0x1084   :  { %v3476_v41 = vmul.f32 %v1000_v38, %v971_v13 }
0x1085   :  { %v1002_v39 = vpop.permute.xlu1 %1001 }
0x1086   :  { %v3474_v40 = vmul.f32 %v1002_v39, %v972_v25 }
0x1088   :  { %v1019_v42 = vrot.slane %v3474_v40, 7 }
0x108a   :  { %v1020_v43 = vsel %vm349_vm4, %v1019_v42, %v3476_v41 }
0x108b   :  { %1021 = vrot.lane.b32.xlu1 %v1020_v43, %s3191_s5 }
0x10fd   :  { %v1022_v44 = vpop.permute.xlu1 %1021 }
0x10fe   :  { %2679 = vmatmul.mubr.msk.f32.vlgmr.msra.gmra.mrb[6].mxu1 %vm207_vm3, %v1022_v44 }
0x11d1   :  { %v1091_v46 = vpop.f32.mrb[6].mxu1 }
0x11d2   :  { %v1096_v47 = vrot.slane %v1091_v46, 1  ;;  %v1099_v48 = vadd.f32 %v1091_v46, %v1017_v45  ;;  %v2680_v50 = vpop.f32.mrb[7].mxu1 }
0x11d4   :  { %v1100_v53 = vadd.f32 %v1096_v47, %v1018_v51  ;;  %2961 = vtanh.f32 %v1099_v48 }
0x11d6   :  { %2963 = vtanh.f32 %v1100_v53 }
0x11de   :  { %v2962_v54 = vpop.eup %2961 }
0x11df   :  { %1111 = vrot.lane.b32.xlu1 %v2962_v54, %s3192_s4  ;;  %v1103_v58 = vadd.f32 1.0, %v2962_v54 }
0x11e0   :  { %v2964_v55 = vpop.eup %2963 }
0x11e1   :  { %1113 = vrot.lane.b32.xlu0 %v2964_v55, %s3192_s4  ;;  %v1104_v59 = vadd.f32 1.0, %v2964_v55  ;;  %v1105_v60 = vmul.f32 0.5, %v1103_v58  ;;  %v1306_v58 = vld [vmem:[#allocation14 + $0x10] sm:$0xff] }
0x11e3   :  { %v1106_v63 = vmul.f32 0.5, %v1104_v59  ;;  %v1107_v6 = vmul.f32 %v1105_v60, %v993_v32 }
0x11e5   :  { %v1108_v10 = vmul.f32 %v1106_v63, %v994_v35 }
0x1251   :  { %v1112_v61 = vpop.permute.xlu1 %1111 }
0x1252   :  { %v1117_v62 = vmul.f32 %v1112_v61, %v1105_v60 }
0x1253   :  { %v1114_v2 = vpop.permute.xlu0 %1113 }
0x1254   :  { %v1118_v3 = vmul.f32 %v1114_v2, %v1106_v63  ;;  %1121 = vrot.lane.b32.xlu1 %v1117_v62, %s3191_s5 }
0x1256   :  { %1123 = vrot.lane.b32.xlu0 %v1118_v3, %s3191_s5 }
0x12c6   :  { %v1122_v7 = vpop.permute.xlu1 %1121 }
0x12c7   :  { %v1127_v9 = vadd.f32 %v1122_v7, %v1107_v6  ;;  %v1401_v7 = vld [vmem:[#allocation2 + $0x2] sm:$0x3] }
0x12c8   :  { %v1124_v11 = vpop.permute.xlu0 %1123 }
0x12c9   :  { %2965 = vtanh.f32 %v1127_v9  ;;  %v1128_v12 = vadd.f32 %v1124_v11, %v1108_v10 }
0x12cb   :  { %2967 = vtanh.f32 %v1128_v12 }
0x12d3   :  { %v2966_v14 = vpop.eup %2965 }
0x12d4   :  { %1133 = vrot.lane.b32.xlu1 %v2966_v14, %s3192_s4 }
0x12d5   :  { %v2968_v15 = vpop.eup %2967 }
0x12d6   :  { %1135 = vrot.lane.b32.xlu0 %v2968_v15, %s3192_s4 }
0x1346   :  { %v1134_v16 = vpop.permute.xlu1 %1133 }
0x1347   :  { %v1139_v8 = vmul.f32 %v1134_v16, %v1105_v60  ;;  %v1307_v60 = vld [vmem:[#allocation14 + $0x18] sm:$0xff] }
0x1348   :  { %v1136_v17 = vpop.permute.xlu0 %1135 }
0x1349   :  { %v1140_v18 = vmul.f32 %v1136_v17, %v1106_v63  ;;  %v3535_v63 = vpack.c.bf16 %v1307_v60, %v1306_v58 }
0x134b   :  { %v1153_v19 = vrot.slane %v1140_v18, 7 }
0x134d   :  { %v1154_v20 = vsel %vm349_vm4, %v1153_v19, %v1139_v8 }
0x134e   :  { %1155 = vrot.lane.b32.xlu0 %v1154_v20, %s3191_s5 }
0x13c0   :  { %v1156_v13 = vpop.permute.xlu0 %1155 }
0x13c1   :  { %2690 = vmatmul.mubr.msk.f32.vlgmr.msra.gmra.mrb[8].mxu0 %vm207_vm3, %v1156_v13 }
0x13c2   :  { %2711 = vmatprep.mubr.msk.f32.mxu0 %vm3189_vm0, %v3190_v1 }
0x1494   :  { %v1225_v24 = vpop.f32.mrb[8].mxu0 }
0x1495   :  { %v1230_v25 = vrot.slane %v1225_v24, 1  ;;  %v1233_v26 = vadd.f32 %v1225_v24, %v1151_v21  ;;  %v2691_v27 = vpop.f32.mrb[9].mxu0 }
0x1496   :  { %v2495_v27 = vld [vmem:[%s3732_s6] ss:$0 sm:$0xff]  ;;  %s3193_s6 = smov 96  }
0x1497   :  { %v1234_v29 = vadd.f32 %v1230_v25, %v1152_v28  ;;  %2969 = vtanh.f32 %v1233_v26 }
0x1499   :  { %2971 = vtanh.f32 %v1234_v29 }
0x14a1   :  { %v2970_v32 = vpop.eup %2969 }
0x14a2   :  { %1245 = vrot.lane.b32.xlu1 %v2970_v32, %s3192_s4  ;;  %v1237_v34 = vadd.f32 1.0, %v2970_v32 }
0x14a3   :  { %v2972_v33 = vpop.eup %2971 }
0x14a4   :  { %1247 = vrot.lane.b32.xlu0 %v2972_v33, %s3192_s4  ;;  %v1238_v35 = vadd.f32 1.0, %v2972_v33  ;;  %v1239_v36 = vmul.f32 0.5, %v1237_v34 }
0x14a6   :  { %v1240_v39 = vmul.f32 0.5, %v1238_v35  ;;  %v1241_v44 = vmul.f32 %v1239_v36, %v1127_v9 }
0x14a8   :  { %v1242_v47 = vmul.f32 %v1240_v39, %v1128_v12 }
0x1514   :  { %v1246_v37 = vpop.permute.xlu1 %1245 }
0x1515   :  { %v1251_v38 = vmul.f32 %v1246_v37, %v1239_v36 }
0x1516   :  { %v1248_v42 = vpop.permute.xlu0 %1247 }
0x1517   :  { %v1252_v43 = vmul.f32 %v1248_v42, %v1240_v39  ;;  %1255 = vrot.lane.b32.xlu1 %v1251_v38, %s3191_s5 }
0x1519   :  { %1257 = vrot.lane.b32.xlu0 %v1252_v43, %s3191_s5 }
0x1589   :  { %v1256_v45 = vpop.permute.xlu1 %1255 }
0x158a   :  { %v1261_v46 = vadd.f32 %v1256_v45, %v1241_v44 }
0x158b   :  { %v1258_v48 = vpop.permute.xlu0 %1257 }
0x158c   :  { %2973 = vtanh.f32 %v1261_v46  ;;  %v1262_v50 = vadd.f32 %v1258_v48, %v1242_v47 }
0x158e   :  { %2975 = vtanh.f32 %v1262_v50  ;;  %v1294_v51 = vrot.slane %v1262_v50, 7 }
0x1590   :  { %v3499_v53 = vsel %vm349_vm4, %v1294_v51, %v1261_v46 }
0x1596   :  { %v2974_v54 = vpop.eup %2973 }
0x1597   :  { %1267 = vrot.lane.b32.xlu1 %v2974_v54, %s3192_s4 }
0x1598   :  { %v2976_v55 = vpop.eup %2975 }
0x1599   :  { %1269 = vrot.lane.b32.xlu0 %v2976_v55, %s3192_s4 }
0x159b   :  { %337 = vrot.lane.b32.xlu1 %v3373_v52, %s3191_s5  ;;  %v1300_v52 = vld [vmem:[#allocation12] sm:$0xff] }
0x159d   :  { %473 = vrot.lane.b32.xlu0 %v3393_v23, %s3191_s5  ;;  %v1301_v23 = vld [vmem:[#allocation12 + $0x8] sm:$0xff] }
0x159f   :  { %607 = vrot.lane.b32.xlu1 %v3414_v57, %s3191_s5  ;;  %v2843_v57 = vpack.c.bf16 %v1301_v23, %v1300_v52 }
0x15a1   :  { %741 = vrot.lane.b32.xlu0 %v3435_v31, %s3191_s5  ;;  %v1303_v31 = vld [vmem:[#allocation12 + $0x18] sm:$0xff]  ;;  %2844 = vmatprep.subr.bf16.mxu1 %v2843_v57 }
0x15a2   :  { %2846 = vmatpush3.bf16.msra.mxu1 %v2843_v57 }
0x15a3   :  { %875 = vrot.lane.b32.xlu1 %v3455_v5, %s3191_s5 }
0x15a5   :  { %1009 = vrot.lane.b32.xlu0 %v3476_v41, %s3191_s5  ;;  %v1305_v41 = vld [vmem:[#allocation14 + $0x8] sm:$0xff] }
0x15a7   :  { %1143 = vrot.lane.b32.xlu1 %v1139_v8, %s3191_s5 }
0x15a9   :  { %475 = vrot.lane.b32.xlu0 %v3391_v22, %s3191_s5  ;;  %v1302_v22 = vld [vmem:[#allocation12 + $0x10] sm:$0xff] }
0x15ab   :  { %339 = vrot.lane.b32.xlu1 %v3370_v49, %s3191_s5  ;;  %v2847_v49 = vpack.c.bf16 %v1303_v31, %v1302_v22 }
0x15ad   :  { %743 = vrot.lane.b32.xlu0 %v3433_v30, %s3191_s5  ;;  %2848 = vmatprep.subr.bf16.mxu1 %v2847_v49 }
0x15ae   :  { %2850 = vmatpush3.bf16.msra.mxu1 %v2847_v49 }
0x15af   :  { %609 = vrot.lane.b32.xlu1 %v3412_v56, %s3191_s5  ;;  %2857 = vmatprep.subr.bf16.mxu1 %v3188_v0 }
0x15b1   :  { %1011 = vrot.lane.b32.xlu0 %v3474_v40, %s3191_s5  ;;  %v1304_v40 = vld [vmem:[#allocation14] sm:$0xff] }
0x15b2   :  { %v3530_v59 = vpack.c.bf16 %v1305_v41, %v1304_v40 }
0x15b3   :  { %877 = vrot.lane.b32.xlu1 %v3453_v4, %s3191_s5 }
0x15b4   :  { %2853 = vmatpush3.bf16.msra.mxu0 %v3530_v59 }
0x15b5   :  { %2854 = vmatprep.subr.bf16.mxu0 %v3188_v0 }
0x15b7   :  { %1145 = vrot.lane.b32.xlu1 %v1140_v18, %s3191_s5 }
0x15b8   :  { %2856 = vmatpush3.bf16.msra.mxu0 %v3535_v63 }
0x15b9   :  { %2863 = vmatprep.subr.bf16.mxu0 %v3188_v0 }
0x15bb   :  { %2712 = vmatmul.mubr.msk.f32.vlgmr.msra.gmra.mrb[10].mxu0 %vm207_vm3, %v1401_v7 }
0x15bc   :  { %2865 = vmatpush3.bf16.msra.mxu0 %v3530_v59  ;;  %2733 = vmatprep.mubr.msk.f32.mxu0 %vm3189_vm0, %v3190_v1 }
0x15bd   :  { %2866 = vmatprep.subr.bf16.mxu0 %v3188_v0 }
0x15c0   :  { %2868 = vmatpush3.bf16.msra.mxu0 %v3535_v63 }
0x15c1   :  { %2875 = vmatprep.subr.bf16.mxu0 %v3188_v0 }
0x1609   :  { %v1268_v30 = vpop.permute.xlu1 %1267 }
0x160a   :  { %v1273_v5 = vmul.f32 %v1268_v30, %v1239_v36 }
0x160b   :  { %v1270_v56 = vpop.permute.xlu0 %1269 }
0x160c   :  { %v1274_v4 = vmul.f32 %v1270_v56, %v1240_v39  ;;  %1277 = vrot.lane.b32.xlu0 %v1273_v5, %s3191_s5  ;;  %v1403_v39 = vld [vmem:[#allocation3 + $0x2] sm:$0x3] }
0x160d   :  { %v338_v61 = vpop.permute.xlu1 %337  ;;  %v1492_v44 = vrot.slane %v1403_v39, 1 }
0x160e   :  { %v1285_v62 = vrot.slane %v1274_v4, 7  ;;  %344 = vst.msk [vmem:[#allocation5] sm:$0x1] %vm343_vm5, %v338_v61 }
0x160f   :  { %v474_v2 = vpop.permute.xlu0 %473 }
0x1610   :  { %479 = vst.msk [vmem:[#allocation5 + $0x1] sm:$0x1] %vm343_vm5, %v474_v2  ;;  %1279 = vrot.lane.b32.xlu0 %v1274_v4, %s3191_s5  ;;  %v3541_v3 = vsel %vm349_vm4, %v1285_v62, %v1273_v5 }
0x1611   :  { %v608_v6 = vpop.permute.xlu1 %607 }
0x1612   :  { %613 = vst.msk [vmem:[#allocation5 + $0x2] sm:$0x1] %vm343_vm5, %v608_v6 }
0x1613   :  { %v742_v9 = vpop.permute.xlu0 %741 }
0x1614   :  { %747 = vst.msk [vmem:[#allocation5 + $0x3] sm:$0x1] %vm343_vm5, %v742_v9 }
0x1615   :  { %v876_v10 = vpop.permute.xlu1 %875 }
0x1616   :  { %881 = vst.msk [vmem:[#allocation5 + $0x4] sm:$0x1] %vm343_vm5, %v876_v10 }
0x1617   :  { %v1010_v11 = vpop.permute.xlu0 %1009 }
0x1618   :  { %1015 = vst.msk [vmem:[#allocation5 + $0x5] sm:$0x1] %vm343_vm5, %v1010_v11 }
0x1619   :  { %v1144_v12 = vpop.permute.xlu1 %1143 }
0x161a   :  { %1149 = vst.msk [vmem:[#allocation5 + $0x6] sm:$0x1] %vm343_vm5, %v1144_v12 }
0x161b   :  { %v476_v14 = vpop.permute.xlu0 %475 }
0x161c   :  { %480 = vst.msk [vmem:[#allocation5 + $0x9] sm:$0x1] %vm343_vm5, %v476_v14 }
0x161d   :  { %v340_v15 = vpop.permute.xlu1 %339 }
0x161e   :  { %345 = vst.msk [vmem:[#allocation5 + $0x8] sm:$0x1] %vm343_vm5, %v340_v15 }
0x161f   :  { %v744_v16 = vpop.permute.xlu0 %743 }
0x1620   :  { %748 = vst.msk [vmem:[#allocation5 + $0xb] sm:$0x1] %vm343_vm5, %v744_v16 }
0x1621   :  { %v610_v17 = vpop.permute.xlu1 %609 }
0x1622   :  { %614 = vst.msk [vmem:[#allocation5 + $0xa] sm:$0x1] %vm343_vm5, %v610_v17 }
0x1623   :  { %v1012_v18 = vpop.permute.xlu0 %1011 }
0x1624   :  { %1016 = vst.msk [vmem:[#allocation5 + $0xd] sm:$0x1] %vm343_vm5, %v1012_v18 }
0x1625   :  { %v878_v8 = vpop.permute.xlu1 %877 }
0x1626   :  { %882 = vst.msk [vmem:[#allocation5 + $0xc] sm:$0x1] %vm343_vm5, %v878_v8 }
0x1629   :  { %v1146_v19 = vpop.permute.xlu1 %1145 }
0x162a   :  { %1150 = vst.msk [vmem:[#allocation5 + $0xe] sm:$0x1] %vm343_vm5, %v1146_v19 }
0x167e   :  { %v1278_v20 = vpop.permute.xlu0 %1277 }
0x167f   :  { %1283 = vst.msk [vmem:[#allocation5 + $0x7] sm:$0x1] %vm343_vm5, %v1278_v20 }
0x1682   :  { %v1280_v13 = vpop.permute.xlu0 %1279 }
0x1683   :  { %1284 = vst.msk [vmem:[#allocation5 + $0xf] sm:$0x1] %vm343_vm5, %v1280_v13 }
0x1686   :  { %v1309_v21 = vld [vmem:[#allocation5] sm:$0xff] }
0x1687   :  { %2700 = vmatprep.mubr.msk.f32.mxu1 %vm207_vm3, %v1309_v21 }
0x168a   :  { %v1310_v24 = vld [vmem:[#allocation5 + $0x8] sm:$0xff] }
0x168b   :  { %2701 = vmatmul.mubr.msk.f32.vlgmr.msra.gmra.mrb[8].mxu1 %vm207_vm3, %v1310_v24 }
0x168c   :  { %2859 = vmatpush3.bf16.msra.mxu1 %v3530_v59  ;;  %2722 = vmatprep.mubr.msk.f32.mxu1 %vm3189_vm0, %v3190_v1 }
0x168d   :  { %2860 = vmatprep.subr.bf16.mxu1 %v3188_v0 }
0x168e   :  { %v1475_v25 = vpop.f32.mrb[10].mxu0 }
0x168f   :  { %v2713_v26 = vpop.f32.mrb[11].mxu0  ;;  %v1480_v34 = vrot.slane %v1475_v25, 1 }
0x1690   :  { %2862 = vmatpush3.bf16.msra.mxu1 %v3535_v63 }
0x1691   :  { %2869 = vmatprep.subr.bf16.mxu1 %v3188_v0 }
0x175e   :  { %v2702_v28 = vpop.f32.mrb[8].mxu1 }
0x175f   :  { %v1395_v29 = vadd.f32 %v2702_v28, %v2495_v27  ;;  %v1389_v32 = vpop.f32.mrb[9].mxu1 }
0x1760   :  { %v1390_v33 = vadd.f32 %v2495_v27, %v1389_v32 }
0x1761   :  { %1399 = vst [vmem:[#allocation4 + $0x8] sm:$0xff] %v1395_v29 }
0x1762   :  { %1398 = vst [vmem:[#allocation4] sm:$0xff] %v1390_v33 }
0x1768   :  { %v1405_v35 = vld [vmem:[#allocation4 + $0x8] sm:$0x1]  ;;  %v1534_v12 = vld [vmem:[#allocation4 + $0x9] sm:$0x1] }
0x1769   :  { %v1404_v36 = vld [vmem:[#allocation4] sm:$0x1]  ;;  %v1484_v37 = vadd.f32 %v1480_v34, %v1405_v35  ;;  %v1533_v6 = vld [vmem:[#allocation4 + $0x1] sm:$0x1] }
0x176a   :  { %v1483_v38 = vadd.f32 %v1475_v25, %v1404_v36 }
0x176b   :  { %2977 = vtanh.f32 %v1484_v37 }
0x176c   :  { %2979 = vtanh.f32 %v1483_v38 }
0x1775   :  { %v2978_v42 = vpop.eup %2977 }
0x1776   :  { %v2980_v43 = vpop.eup %2979  ;;  %1505 = vrot.lane.b32.xlu1 %v2978_v42, %s3192_s4  ;;  %v1488_v45 = vadd.f32 1.0, %v2978_v42 }
0x1777   :  { %1503 = vrot.lane.b32.xlu0 %v2980_v43, %s3192_s4  ;;  %v1487_v46 = vadd.f32 1.0, %v2980_v43 }
0x1778   :  { %v1490_v47 = vmul.f32 0.5, %v1488_v45 }
0x1779   :  { %v1489_v50 = vmul.f32 0.5, %v1487_v46 }
0x177a   :  { %1495 = vrot.lane.b32.xlu1 %v1492_v44, %s3191_s5  ;;  %v1659_v44 = vld [vmem:[#allocation4 + $0x2] sm:$0x1] }
0x177b   :  { %1493 = vrot.lane.b32.xlu0 %v1403_v39, %s3191_s5 }
0x17e8   :  { %v1506_v48 = vpop.permute.xlu1 %1505 }
0x17e9   :  { %v1510_v51 = vmul.f32 %v1506_v48, %v1490_v47  ;;  %v1504_v54 = vpop.permute.xlu0 %1503 }
0x17ea   :  { %v1509_v55 = vmul.f32 %v1504_v54, %v1489_v50 }
0x17eb   :  { %1515 = vrot.lane.b32.xlu1 %v1510_v51, %s3191_s5 }
0x17ec   :  { %1513 = vrot.lane.b32.xlu0 %v1509_v55, %s3191_s5  ;;  %v1496_v52 = vpop.permute.xlu1 %1495 }
0x17ed   :  { %v1494_v23 = vpop.permute.xlu0 %1493  ;;  %v1500_v22 = vmul.f32 %v1496_v52, %v1490_v47 }
0x17ee   :  { %v1499_v57 = vmul.f32 %v1494_v23, %v1489_v50 }
0x185d   :  { %v1516_v31 = vpop.permute.xlu1 %1515 }
0x185e   :  { %v1520_v49 = vadd.f32 %v1516_v31, %v1500_v22  ;;  %v1514_v30 = vpop.permute.xlu0 %1513 }
0x185f   :  { %v1519_v5 = vadd.f32 %v1514_v30, %v1499_v57 }
0x1860   :  { %2981 = vtanh.f32 %v1520_v49 }
0x1861   :  { %2983 = vtanh.f32 %v1519_v5 }
0x186a   :  { %v2982_v56 = vpop.eup %2981 }
0x186b   :  { %v2984_v40 = vpop.eup %2983  ;;  %1527 = vrot.lane.b32.xlu1 %v2982_v56, %s3192_s4 }
0x186c   :  { %1525 = vrot.lane.b32.xlu0 %v2984_v40, %s3192_s4 }
0x18dd   :  { %v1528_v41 = vpop.permute.xlu1 %1527 }
0x18de   :  { %v1532_v58 = vmul.f32 %v1528_v41, %v1490_v47  ;;  %v1526_v4 = vpop.permute.xlu0 %1525 }
0x18df   :  { %v1531_v60 = vmul.f32 %v1526_v4, %v1489_v50  ;;  %v1660_v50 = vld [vmem:[#allocation4 + $0xa] sm:$0x1] }
0x18e0   :  { %v1537_v61 = vrot.slane %v1532_v58, 7 }
0x18e2   :  { %v1538_v62 = vsel %vm349_vm4, %v1537_v61, %v1531_v60 }
0x18e3   :  { %1539 = vrot.lane.b32.xlu1 %v1538_v62, %s3191_s5 }
0x1955   :  { %v3587_v2 = vpop.permute.xlu1 %1539 }
0x1956   :  { %2723 = vmatmul.mubr.msk.f32.vlgmr.msra.gmra.mrb[10].mxu1 %vm207_vm3, %v3587_v2 }
0x1957   :  { %2871 = vmatpush3.bf16.msra.mxu1 %v3530_v59  ;;  %2744 = vmatprep.mubr.msk.f32.mxu1 %vm3189_vm0, %v3190_v1 }
0x1958   :  { %2872 = vmatprep.subr.bf16.mxu1 %v3188_v0 }
0x195b   :  { %2874 = vmatpush3.bf16.msra.mxu1 %v3535_v63 }
0x195c   :  { %2881 = vmatprep.subr.bf16.mxu1 %v3188_v0 }
0x1a29   :  { %v1609_v7 = vpop.f32.mrb[10].mxu1 }
0x1a2a   :  { %v1614_v9 = vrot.slane %v1609_v7, 1  ;;  %v1617_v10 = vadd.f32 %v1609_v7, %v1533_v6  ;;  %v2724_v11 = vpop.f32.mrb[11].mxu1 }
0x1a2c   :  { %v1618_v14 = vadd.f32 %v1614_v9, %v1534_v12  ;;  %2985 = vtanh.f32 %v1617_v10 }
0x1a2e   :  { %2987 = vtanh.f32 %v1618_v14 }
0x1a36   :  { %v2986_v15 = vpop.eup %2985 }
0x1a37   :  { %1629 = vrot.lane.b32.xlu1 %v2986_v15, %s3192_s4  ;;  %v1621_v17 = vadd.f32 1.0, %v2986_v15  ;;  %v1785_v15 = vld [vmem:[#allocation4 + $0x3] sm:$0x1] }
0x1a38   :  { %v2988_v16 = vpop.eup %2987 }
0x1a39   :  { %1631 = vrot.lane.b32.xlu0 %v2988_v16, %s3192_s4  ;;  %v1622_v18 = vadd.f32 1.0, %v2988_v16  ;;  %v1623_v8 = vmul.f32 0.5, %v1621_v17 }
0x1a3b   :  { %v1624_v13 = vmul.f32 0.5, %v1622_v18  ;;  %v1625_v25 = vmul.f32 %v1623_v8, %v1519_v5 }
0x1a3d   :  { %v1626_v28 = vmul.f32 %v1624_v13, %v1520_v49 }
0x1aa9   :  { %v1630_v19 = vpop.permute.xlu1 %1629 }
0x1aaa   :  { %v1635_v20 = vmul.f32 %v1630_v19, %v1623_v8  ;;  %v1786_v19 = vld [vmem:[#allocation4 + $0xb] sm:$0x1] }
0x1aab   :  { %v1632_v21 = vpop.permute.xlu0 %1631 }
0x1aac   :  { %v1636_v24 = vmul.f32 %v1632_v21, %v1624_v13  ;;  %1639 = vrot.lane.b32.xlu1 %v1635_v20, %s3191_s5 }
0x1aae   :  { %1641 = vrot.lane.b32.xlu0 %v1636_v24, %s3191_s5 }
0x1b1e   :  { %v1640_v26 = vpop.permute.xlu1 %1639 }
0x1b1f   :  { %v1645_v27 = vadd.f32 %v1640_v26, %v1625_v25 }
0x1b20   :  { %v1642_v29 = vpop.permute.xlu0 %1641 }
0x1b21   :  { %2989 = vtanh.f32 %v1645_v27  ;;  %v1646_v32 = vadd.f32 %v1642_v29, %v1626_v28 }
0x1b23   :  { %2991 = vtanh.f32 %v1646_v32 }
0x1b2b   :  { %v2990_v33 = vpop.eup %2989 }
0x1b2c   :  { %1651 = vrot.lane.b32.xlu1 %v2990_v33, %s3192_s4 }
0x1b2d   :  { %v2992_v34 = vpop.eup %2991 }
0x1b2e   :  { %1653 = vrot.lane.b32.xlu0 %v2992_v34, %s3192_s4 }
0x1b9e   :  { %v1652_v35 = vpop.permute.xlu1 %1651 }
0x1b9f   :  { %v1657_v38 = vmul.f32 %v1652_v35, %v1623_v8 }
0x1ba0   :  { %v1654_v36 = vpop.permute.xlu0 %1653 }
0x1ba1   :  { %v1658_v37 = vmul.f32 %v1654_v36, %v1624_v13 }
0x1ba3   :  { %v1663_v39 = vrot.slane %v1658_v37, 7 }
0x1ba5   :  { %v3604_v42 = vsel %vm349_vm4, %v1663_v39, %v1657_v38 }
0x1ba6   :  { %1665 = vrot.lane.b32.xlu0 %v3604_v42, %s3191_s5 }
0x1c18   :  { %v1666_v43 = vpop.permute.xlu0 %1665 }
0x1c19   :  { %2734 = vmatmul.mubr.msk.f32.vlgmr.msra.gmra.mrb[12].mxu0 %vm207_vm3, %v1666_v43 }
0x1c1a   :  { %2877 = vmatpush3.bf16.msra.mxu0 %v3530_v59  ;;  %2755 = vmatprep.mubr.msk.f32.mxu0 %vm3189_vm0, %v3190_v1 }
0x1c1b   :  { %2878 = vmatprep.subr.bf16.mxu0 %v3188_v0 }
0x1c1e   :  { %2880 = vmatpush3.bf16.msra.mxu0 %v3535_v63 }
0x1c1f   :  { %2887 = vmatprep.subr.bf16.mxu0 %v3188_v0 }
0x1cec   :  { %v1735_v45 = vpop.f32.mrb[12].mxu0 }
0x1ced   :  { %v1740_v46 = vrot.slane %v1735_v45, 1  ;;  %v1743_v47 = vadd.f32 %v1735_v45, %v1659_v44  ;;  %v2735_v48 = vpop.f32.mrb[13].mxu0 }
0x1cef   :  { %v1744_v51 = vadd.f32 %v1740_v46, %v1660_v50  ;;  %2993 = vtanh.f32 %v1743_v47 }
0x1cf1   :  { %2995 = vtanh.f32 %v1744_v51 }
0x1cf9   :  { %v2994_v54 = vpop.eup %2993 }
0x1cfa   :  { %1755 = vrot.lane.b32.xlu0 %v2994_v54, %s3192_s4  ;;  %v1747_v52 = vadd.f32 1.0, %v2994_v54 }
0x1cfb   :  { %v2996_v55 = vpop.eup %2995 }
0x1cfc   :  { %1757 = vrot.lane.b32.xlu1 %v2996_v55, %s3192_s4  ;;  %v1748_v23 = vadd.f32 1.0, %v2996_v55  ;;  %v1749_v22 = vmul.f32 0.5, %v1747_v52  ;;  %v1911_v55 = vld [vmem:[#allocation4 + $0x4] sm:$0x1] }
0x1cfe   :  { %v1750_v49 = vmul.f32 0.5, %v1748_v23  ;;  %v1751_v56 = vmul.f32 %v1749_v22, %v1645_v27 }
0x1d00   :  { %v1752_v58 = vmul.f32 %v1750_v49, %v1646_v32 }
0x1d6c   :  { %v1756_v57 = vpop.permute.xlu0 %1755 }
0x1d6d   :  { %v1761_v31 = vmul.f32 %v1756_v57, %v1749_v22 }
0x1d6e   :  { %v1758_v30 = vpop.permute.xlu1 %1757 }
0x1d6f   :  { %v1762_v5 = vmul.f32 %v1758_v30, %v1750_v49  ;;  %1765 = vrot.lane.b32.xlu0 %v1761_v31, %s3191_s5  ;;  %v1912_v31 = vld [vmem:[#allocation4 + $0xc] sm:$0x1] }
0x1d71   :  { %1767 = vrot.lane.b32.xlu1 %v1762_v5, %s3191_s5 }
0x1de1   :  { %v1766_v40 = vpop.permute.xlu0 %1765 }
0x1de2   :  { %v1771_v41 = vadd.f32 %v1766_v40, %v1751_v56 }
0x1de3   :  { %v1768_v4 = vpop.permute.xlu1 %1767 }
0x1de4   :  { %2997 = vtanh.f32 %v1771_v41  ;;  %v1772_v60 = vadd.f32 %v1768_v4, %v1752_v58 }
0x1de6   :  { %2999 = vtanh.f32 %v1772_v60 }
0x1dee   :  { %v2998_v61 = vpop.eup %2997 }
0x1def   :  { %1777 = vrot.lane.b32.xlu0 %v2998_v61, %s3192_s4 }
0x1df0   :  { %v3000_v62 = vpop.eup %2999 }
0x1df1   :  { %1779 = vrot.lane.b32.xlu1 %v3000_v62, %s3192_s4 }
0x1e61   :  { %v1778_v6 = vpop.permute.xlu0 %1777 }
0x1e62   :  { %v1783_v10 = vmul.f32 %v1778_v6, %v1749_v22 }
0x1e63   :  { %v1780_v7 = vpop.permute.xlu1 %1779 }
0x1e64   :  { %v1784_v9 = vmul.f32 %v1780_v7, %v1750_v49 }
0x1e66   :  { %v1789_v11 = vrot.slane %v1784_v9, 7 }
0x1e68   :  { %v3622_v12 = vsel %vm349_vm4, %v1789_v11, %v1783_v10 }
0x1e69   :  { %1791 = vrot.lane.b32.xlu1 %v3622_v12, %s3191_s5 }
0x1edb   :  { %v1792_v14 = vpop.permute.xlu1 %1791 }
0x1edc   :  { %2745 = vmatmul.mubr.msk.f32.vlgmr.msra.gmra.mrb[12].mxu1 %vm207_vm3, %v1792_v14 }
0x1edd   :  { %2883 = vmatpush3.bf16.msra.mxu1 %v3530_v59  ;;  %2766 = vmatprep.mubr.msk.f32.mxu1 %vm3189_vm0, %v3190_v1 }
0x1ede   :  { %2884 = vmatprep.subr.bf16.mxu1 %v3188_v0 }
0x1ee1   :  { %2886 = vmatpush3.bf16.msra.mxu1 %v3535_v63 }
0x1ee2   :  { %2893 = vmatprep.subr.bf16.mxu1 %v3188_v0 }
0x1faf   :  { %v1861_v16 = vpop.f32.mrb[12].mxu1 }
0x1fb0   :  { %v1866_v17 = vrot.slane %v1861_v16, 1  ;;  %v1869_v18 = vadd.f32 %v1861_v16, %v1785_v15  ;;  %v2746_v8 = vpop.f32.mrb[13].mxu1 }
0x1fb2   :  { %v1870_v20 = vadd.f32 %v1866_v17, %v1786_v19  ;;  %3001 = vtanh.f32 %v1869_v18 }
0x1fb4   :  { %3003 = vtanh.f32 %v1870_v20 }
0x1fbc   :  { %v3002_v13 = vpop.eup %3001 }
0x1fbd   :  { %1881 = vrot.lane.b32.xlu1 %v3002_v13, %s3192_s4  ;;  %v1873_v24 = vadd.f32 1.0, %v3002_v13 }
0x1fbe   :  { %v3004_v21 = vpop.eup %3003 }
0x1fbf   :  { %1883 = vrot.lane.b32.xlu0 %v3004_v21, %s3192_s4  ;;  %v1874_v25 = vadd.f32 1.0, %v3004_v21  ;;  %v1875_v26 = vmul.f32 0.5, %v1873_v24  ;;  %v2037_v24 = vld [vmem:[#allocation4 + $0x5] sm:$0x1] }
0x1fc1   :  { %v1876_v29 = vmul.f32 0.5, %v1874_v25  ;;  %v1877_v34 = vmul.f32 %v1875_v26, %v1771_v41 }
0x1fc3   :  { %v1878_v37 = vmul.f32 %v1876_v29, %v1772_v60 }
0x202f   :  { %v1882_v27 = vpop.permute.xlu1 %1881 }
0x2030   :  { %v1887_v28 = vmul.f32 %v1882_v27, %v1875_v26 }
0x2031   :  { %v1884_v32 = vpop.permute.xlu0 %1883 }
0x2032   :  { %v1888_v33 = vmul.f32 %v1884_v32, %v1876_v29  ;;  %1891 = vrot.lane.b32.xlu1 %v1887_v28, %s3191_s5 }
0x2034   :  { %1893 = vrot.lane.b32.xlu0 %v1888_v33, %s3191_s5 }
0x20a4   :  { %v1892_v35 = vpop.permute.xlu1 %1891 }
0x20a5   :  { %v1897_v36 = vadd.f32 %v1892_v35, %v1877_v34 }
0x20a6   :  { %v1894_v38 = vpop.permute.xlu0 %1893 }
0x20a7   :  { %3005 = vtanh.f32 %v1897_v36  ;;  %v1898_v39 = vadd.f32 %v1894_v38, %v1878_v37 }
0x20a9   :  { %3007 = vtanh.f32 %v1898_v39 }
0x20b1   :  { %v3006_v43 = vpop.eup %3005 }
0x20b2   :  { %1903 = vrot.lane.b32.xlu1 %v3006_v43, %s3192_s4 }
0x20b3   :  { %v3008_v44 = vpop.eup %3007 }
0x20b4   :  { %1905 = vrot.lane.b32.xlu0 %v3008_v44, %s3192_s4 }
0x2124   :  { %v1904_v45 = vpop.permute.xlu1 %1903 }
0x2125   :  { %v1909_v48 = vmul.f32 %v1904_v45, %v1875_v26 }
0x2126   :  { %v1906_v46 = vpop.permute.xlu0 %1905 }
0x2127   :  { %v1910_v47 = vmul.f32 %v1906_v46, %v1876_v29  ;;  %v2038_v29 = vld [vmem:[#allocation4 + $0xd] sm:$0x1] }
0x2129   :  { %v1915_v50 = vrot.slane %v1910_v47, 7 }
0x212b   :  { %v3640_v51 = vsel %vm349_vm4, %v1915_v50, %v1909_v48 }
0x212c   :  { %1917 = vrot.lane.b32.xlu0 %v3640_v51, %s3191_s5 }
0x219e   :  { %v1918_v54 = vpop.permute.xlu0 %1917 }
0x219f   :  { %2756 = vmatmul.mubr.msk.f32.vlgmr.msra.gmra.mrb[14].mxu0 %vm207_vm3, %v1918_v54 }
0x21a0   :  { %2889 = vmatpush3.bf16.msra.mxu0 %v3530_v59  ;;  %2777 = vmatprep.mubr.msk.f32.mxu0 %vm3189_vm0, %v3190_v1 }
0x21a1   :  { %2890 = vmatprep.subr.bf16.mxu0 %v3188_v0 }
0x21a4   :  { %2892 = vmatpush3.bf16.msra.mxu0 %v3535_v63 }
0x2272   :  { %v1987_v52 = vpop.f32.mrb[14].mxu0 }
0x2273   :  { %v1992_v23 = vrot.slane %v1987_v52, 1  ;;  %v1995_v22 = vadd.f32 %v1987_v52, %v1911_v55  ;;  %v2757_v57 = vpop.f32.mrb[15].mxu0 }
0x2275   :  { %v1996_v49 = vadd.f32 %v1992_v23, %v1912_v31  ;;  %3009 = vtanh.f32 %v1995_v22 }
0x2277   :  { %3011 = vtanh.f32 %v1996_v49  ;;  %v2163_v49 = vld [vmem:[#allocation4 + $0x6] sm:$0x1] }
0x227f   :  { %v3010_v30 = vpop.eup %3009 }
0x2280   :  { %2007 = vrot.lane.b32.xlu0 %v3010_v30, %s3192_s4  ;;  %v1999_v56 = vadd.f32 1.0, %v3010_v30 }
0x2281   :  { %v3012_v5 = vpop.eup %3011 }
0x2282   :  { %2009 = vrot.lane.b32.xlu1 %v3012_v5, %s3192_s4  ;;  %v2000_v40 = vadd.f32 1.0, %v3012_v5  ;;  %v2001_v41 = vmul.f32 0.5, %v1999_v56 }
0x2284   :  { %v2002_v60 = vmul.f32 0.5, %v2000_v40  ;;  %v2003_v6 = vmul.f32 %v2001_v41, %v1897_v36 }
0x2286   :  { %v2004_v10 = vmul.f32 %v2002_v60, %v1898_v39 }
0x22f2   :  { %v2008_v58 = vpop.permute.xlu0 %2007 }
0x22f3   :  { %v2013_v4 = vmul.f32 %v2008_v58, %v2001_v41 }
0x22f4   :  { %v2010_v61 = vpop.permute.xlu1 %2009 }
0x22f5   :  { %v2014_v62 = vmul.f32 %v2010_v61, %v2002_v60  ;;  %2017 = vrot.lane.b32.xlu0 %v2013_v4, %s3191_s5 }
0x22f7   :  { %2019 = vrot.lane.b32.xlu1 %v2014_v62, %s3191_s5 }
0x2367   :  { %v2018_v7 = vpop.permute.xlu0 %2017 }
0x2368   :  { %v2023_v9 = vadd.f32 %v2018_v7, %v2003_v6 }
0x2369   :  { %v2020_v11 = vpop.permute.xlu1 %2019 }
0x236a   :  { %3013 = vtanh.f32 %v2023_v9  ;;  %v2024_v14 = vadd.f32 %v2020_v11, %v2004_v10 }
0x236c   :  { %3015 = vtanh.f32 %v2024_v14 }
0x2374   :  { %v3014_v15 = vpop.eup %3013 }
0x2375   :  { %2029 = vrot.lane.b32.xlu0 %v3014_v15, %s3192_s4 }
0x2376   :  { %v3016_v16 = vpop.eup %3015 }
0x2377   :  { %2031 = vrot.lane.b32.xlu1 %v3016_v16, %s3192_s4 }
0x23e7   :  { %v2030_v17 = vpop.permute.xlu0 %2029 }
0x23e8   :  { %v2035_v19 = vmul.f32 %v2030_v17, %v2001_v41  ;;  %v2164_v41 = vld [vmem:[#allocation4 + $0xe] sm:$0x1] }
0x23e9   :  { %v2032_v18 = vpop.permute.xlu1 %2031 }
0x23ea   :  { %v2036_v8 = vmul.f32 %v2032_v18, %v2002_v60 }
0x23ec   :  { %v2041_v20 = vrot.slane %v2036_v8, 7 }
0x23ee   :  { %v2042_v13 = vsel %vm349_vm4, %v2041_v20, %v2035_v19 }
0x23ef   :  { %2043 = vrot.lane.b32.xlu1 %v2042_v13, %s3191_s5 }
0x2461   :  { %v3658_v21 = vpop.permute.xlu1 %2043 }
0x2462   :  { %2767 = vmatmul.mubr.msk.f32.vlgmr.msra.gmra.mrb[14].mxu1 %vm207_vm3, %v3658_v21 }
0x2463   :  { %2895 = vmatpush3.bf16.msra.mxu1 %v3530_v59  ;;  %2788 = vmatprep.mubr.msk.f32.mxu1 %vm3189_vm0, %v3190_v1 }
0x2464   :  { %2896 = vmatprep.subr.bf16.mxu1 %v3188_v0 }
0x2467   :  { %2898 = vmatpush3.bf16.msra.mxu1 %v3535_v63 }
0x2535   :  { %v2113_v25 = vpop.f32.mrb[14].mxu1 }
0x2536   :  { %v2118_v26 = vrot.slane %v2113_v25, 1  ;;  %v2121_v27 = vadd.f32 %v2113_v25, %v2037_v24  ;;  %v2768_v28 = vpop.f32.mrb[15].mxu1 }
0x2538   :  { %v2122_v32 = vadd.f32 %v2118_v26, %v2038_v29  ;;  %3017 = vtanh.f32 %v2121_v27 }
0x253a   :  { %3019 = vtanh.f32 %v2122_v32 }
0x2542   :  { %v3018_v33 = vpop.eup %3017 }
0x2543   :  { %2133 = vrot.lane.b32.xlu1 %v3018_v33, %s3192_s4  ;;  %v2125_v1 = vadd.f32 1.0, %v3018_v33  ;;  %v2289_v33 = vld [vmem:[#allocation4 + $0x7] sm:$0x1] }
0x2544   :  { %v3020_v59 = vpop.eup %3019 }
0x2545   :  { %2135 = vrot.lane.b32.xlu0 %v3020_v59, %s3192_s4  ;;  %v2126_v34 = vadd.f32 1.0, %v3020_v59  ;;  %v2127_v0 = vmul.f32 0.5, %v2125_v1 }
0x2547   :  { %v2128_v36 = vmul.f32 0.5, %v2126_v34  ;;  %v2129_v39 = vmul.f32 %v2127_v0, %v2023_v9 }
0x2549   :  { %v2130_v45 = vmul.f32 %v2128_v36, %v2024_v14 }
0x25b5   :  { %v2134_v35 = vpop.permute.xlu1 %2133 }
0x25b6   :  { %v2139_v63 = vmul.f32 %v2134_v35, %v2127_v0  ;;  %v2290_v35 = vld [vmem:[#allocation4 + $0xf] sm:$0x1] }
0x25b7   :  { %v2136_v37 = vpop.permute.xlu0 %2135 }
0x25b8   :  { %v2140_v38 = vmul.f32 %v2136_v37, %v2128_v36  ;;  %2143 = vrot.lane.b32.xlu1 %v2139_v63, %s3191_s5 }
0x25ba   :  { %2145 = vrot.lane.b32.xlu0 %v2140_v38, %s3191_s5 }
0x262a   :  { %v2144_v43 = vpop.permute.xlu1 %2143 }
0x262b   :  { %v2149_v44 = vadd.f32 %v2144_v43, %v2129_v39 }
0x262c   :  { %v2146_v46 = vpop.permute.xlu0 %2145 }
0x262d   :  { %3021 = vtanh.f32 %v2149_v44  ;;  %v2150_v47 = vadd.f32 %v2146_v46, %v2130_v45 }
0x262f   :  { %3023 = vtanh.f32 %v2150_v47 }
0x2637   :  { %v3022_v48 = vpop.eup %3021 }
0x2638   :  { %2155 = vrot.lane.b32.xlu1 %v3022_v48, %s3192_s4 }
0x2639   :  { %v3024_v50 = vpop.eup %3023 }
0x263a   :  { %2157 = vrot.lane.b32.xlu0 %v3024_v50, %s3192_s4 }
0x26aa   :  { %v2156_v54 = vpop.permute.xlu1 %2155 }
0x26ab   :  { %v2161_v23 = vmul.f32 %v2156_v54, %v2127_v0 }
0x26ac   :  { %v2158_v55 = vpop.permute.xlu0 %2157 }
0x26ad   :  { %v2162_v52 = vmul.f32 %v2158_v55, %v2128_v36 }
0x26af   :  { %v2167_v22 = vrot.slane %v2162_v52, 7 }
0x26b1   :  { %v3674_v57 = vsel %vm349_vm4, %v2167_v22, %v2161_v23 }
0x26b2   :  { %2169 = vrot.lane.b32.xlu0 %v3674_v57, %s3191_s5 }
0x2724   :  { %v2170_v31 = vpop.permute.xlu0 %2169 }
0x2725   :  { %2778 = vmatmul.mubr.msk.f32.vlgmr.msra.gmra.mrb[16].mxu0 %vm207_vm3, %v2170_v31 }
0x27f8   :  { %v2239_v30 = vpop.f32.mrb[16].mxu0 }
0x27f9   :  { %v2244_v5 = vrot.slane %v2239_v30, 1  ;;  %v2247_v56 = vadd.f32 %v2239_v30, %v2163_v49  ;;  %v2779_v40 = vpop.f32.mrb[17].mxu0 }
0x27fb   :  { %v2248_v58 = vadd.f32 %v2244_v5, %v2164_v41  ;;  %3025 = vtanh.f32 %v2247_v56 }
0x27fd   :  { %3027 = vtanh.f32 %v2248_v58 }
0x2805   :  { %v3026_v4 = vpop.eup %3025 }
0x2806   :  { %2259 = vrot.lane.b32.xlu0 %v3026_v4, %s3192_s4  ;;  %v2251_v61 = vadd.f32 1.0, %v3026_v4 }
0x2807   :  { %v3028_v60 = vpop.eup %3027 }
0x2808   :  { %2261 = vrot.lane.b32.xlu1 %v3028_v60, %s3192_s4  ;;  %v2252_v62 = vadd.f32 1.0, %v3028_v60  ;;  %v2253_v6 = vmul.f32 0.5, %v2251_v61 }
0x280a   :  { %v2254_v10 = vmul.f32 0.5, %v2252_v62  ;;  %v2255_v15 = vmul.f32 %v2253_v6, %v2149_v44 }
0x280c   :  { %v2256_v18 = vmul.f32 %v2254_v10, %v2150_v47 }
0x2878   :  { %v2260_v7 = vpop.permute.xlu0 %2259 }
0x2879   :  { %v2265_v9 = vmul.f32 %v2260_v7, %v2253_v6 }
0x287a   :  { %v2262_v11 = vpop.permute.xlu1 %2261 }
0x287b   :  { %v2266_v14 = vmul.f32 %v2262_v11, %v2254_v10  ;;  %2269 = vrot.lane.b32.xlu0 %v2265_v9, %s3191_s5 }
0x287d   :  { %2271 = vrot.lane.b32.xlu1 %v2266_v14, %s3191_s5 }
0x28ed   :  { %v2270_v16 = vpop.permute.xlu0 %2269 }
0x28ee   :  { %v2275_v17 = vadd.f32 %v2270_v16, %v2255_v15 }
0x28ef   :  { %v2272_v8 = vpop.permute.xlu1 %2271 }
0x28f0   :  { %3029 = vtanh.f32 %v2275_v17  ;;  %v2276_v19 = vadd.f32 %v2272_v8, %v2256_v18 }
0x28f2   :  { %3031 = vtanh.f32 %v2276_v19 }
0x28fa   :  { %v3030_v20 = vpop.eup %3029 }
0x28fb   :  { %2281 = vrot.lane.b32.xlu0 %v3030_v20, %s3192_s4 }
0x28fc   :  { %v3032_v13 = vpop.eup %3031 }
0x28fd   :  { %2283 = vrot.lane.b32.xlu1 %v3032_v13, %s3192_s4 }
0x296d   :  { %v2282_v24 = vpop.permute.xlu0 %2281 }
0x296e   :  { %v2287_v27 = vmul.f32 %v2282_v24, %v2253_v6 }
0x296f   :  { %v2284_v25 = vpop.permute.xlu1 %2283 }
0x2970   :  { %v2288_v26 = vmul.f32 %v2284_v25, %v2254_v10 }
0x2972   :  { %v2293_v28 = vrot.slane %v2288_v26, 7 }
0x2974   :  { %v2294_v29 = vsel %vm349_vm4, %v2293_v28, %v2287_v27 }
0x2975   :  { %2295 = vrot.lane.b32.xlu1 %v2294_v29, %s3191_s5 }
0x29e7   :  { %v2296_v32 = vpop.permute.xlu1 %2295 }
0x29e8   :  { %2789 = vmatmul.mubr.msk.f32.vlgmr.msra.gmra.mrb[16].mxu1 %vm207_vm3, %v2296_v32 }
0x2abb   :  { %v2365_v59 = vpop.f32.mrb[16].mxu1 }
0x2abc   :  { %v2370_v1 = vrot.slane %v2365_v59, 1  ;;  %v2373_v34 = vadd.f32 %v2365_v59, %v2289_v33  ;;  %v2790_v0 = vpop.f32.mrb[17].mxu1 }
0x2abe   :  { %v2374_v63 = vadd.f32 %v2370_v1, %v2290_v35  ;;  %3033 = vtanh.f32 %v2373_v34 }
0x2ac0   :  { %3035 = vtanh.f32 %v2374_v63 }
0x2ac8   :  { %v3034_v36 = vpop.eup %3033 }
0x2ac9   :  { %2385 = vrot.lane.b32.xlu1 %v3034_v36, %s3192_s4  ;;  %v2377_v38 = vadd.f32 1.0, %v3034_v36 }
0x2aca   :  { %v3036_v37 = vpop.eup %3035 }
0x2acb   :  { %2387 = vrot.lane.b32.xlu0 %v3036_v37, %s3192_s4  ;;  %v2378_v39 = vadd.f32 1.0, %v3036_v37  ;;  %v2379_v43 = vmul.f32 0.5, %v2377_v38 }
0x2acd   :  { %v2380_v46 = vmul.f32 0.5, %v2378_v39  ;;  %v2381_v50 = vmul.f32 %v2379_v43, %v2275_v17 }
0x2acf   :  { %v2382_v52 = vmul.f32 %v2380_v46, %v2276_v19 }
0x2b3b   :  { %v2386_v44 = vpop.permute.xlu1 %2385 }
0x2b3c   :  { %v2391_v45 = vmul.f32 %v2386_v44, %v2379_v43 }
0x2b3d   :  { %v2388_v47 = vpop.permute.xlu0 %2387 }
0x2b3e   :  { %v2392_v48 = vmul.f32 %v2388_v47, %v2380_v46  ;;  %2395 = vrot.lane.b32.xlu1 %v2391_v45, %s3191_s5 }
0x2b40   :  { %2397 = vrot.lane.b32.xlu0 %v2392_v48, %s3191_s5 }
0x2bb0   :  { %v2396_v54 = vpop.permute.xlu1 %2395 }
0x2bb1   :  { %v2401_v55 = vadd.f32 %v2396_v54, %v2381_v50 }
0x2bb2   :  { %v2398_v23 = vpop.permute.xlu0 %2397 }
0x2bb3   :  { %3037 = vtanh.f32 %v2401_v55  ;;  %v2402_v22 = vadd.f32 %v2398_v23, %v2382_v52 }
0x2bb5   :  { %3039 = vtanh.f32 %v2402_v22  ;;  %v2425_v30 = vrot.slane %v2402_v22, 7 }
0x2bb7   :  { %v2426_v5 = vsel %vm349_vm4, %v2425_v30, %v2401_v55 }
0x2bbd   :  { %v3038_v31 = vpop.eup %3037 }
0x2bbe   :  { %2407 = vrot.lane.b32.xlu1 %v3038_v31, %s3192_s4 }
0x2bbf   :  { %v3040_v49 = vpop.eup %3039 }
0x2bc0   :  { %2409 = vrot.lane.b32.xlu0 %v3040_v49, %s3192_s4 }
0x2bc2   :  { %2440 = vrot.lane.b32.xlu1 %v3674_v57, %s3192_s4 }
0x2bc4   :  { %2432 = vrot.lane.b32.xlu0 %v3604_v42, %s3192_s4 }
0x2bc6   :  { %2443 = vrot.lane.b32.xlu1 %v2294_v29, %s3193_s6 }
0x2bc8   :  { %2435 = vrot.lane.b32.xlu0 %v3622_v12, %s3193_s6 }
0x2bca   :  { %1296 = vrot.lane.b32.xlu1 %v3499_v53, %s3193_s6 }
0x2bcc   :  { %1287 = vrot.lane.b32.xlu0 %v3541_v3, %s3191_s5 }
0x2bce   :  { %2427 = vrot.lane.b32.xlu1 %v2426_v5, %s3193_s6 }
0x2c30   :  { %v2408_v56 = vpop.permute.xlu1 %2407 }
0x2c31   :  { %v2413_v58 = vmul.f32 %v2408_v56, %v2379_v43 }
0x2c32   :  { %v2410_v40 = vpop.permute.xlu0 %2409 }
0x2c33   :  { %v2414_v41 = vmul.f32 %v2410_v40, %v2380_v46 }
0x2c34   :  { %v2441_v57 = vpop.permute.xlu1 %2440 }
0x2c35   :  { %v2417_v4 = vrot.slane %v2414_v41, 7  ;;  %v2452_v12 = vsel %vm207_vm3, %v3658_v21, %v2441_v57 }
0x2c36   :  { %v2433_v42 = vpop.permute.xlu0 %2432 }
0x2c37   :  { %v2418_v60 = vsel %vm349_vm4, %v2417_v4, %v2413_v58  ;;  %v2447_v61 = vsel %vm207_vm3, %v3587_v2, %v2433_v42 }
0x2c38   :  { %v2444_v53 = vpop.permute.xlu1 %2443  ;;  %2419 = vrot.lane.b32.xlu0 %v2418_v60, %s3191_s5 }
0x2c39   :  { %v2453_v3 = vsel %vm2448_vm6, %v2452_v12, %v2444_v53 }
0x2c3a   :  { %v2436_v62 = vpop.permute.xlu0 %2435  ;;  %v2454_v10 = vsel %vm2450_vm7, %v2453_v3, %v2418_v60 }
0x2c3b   :  { %v2449_v6 = vsel %vm2448_vm6, %v2447_v61, %v2436_v62 }
0x2c3c   :  { %v2451_v7 = vsel %vm2450_vm7, %v2449_v6, %v3640_v51  ;;  %v1297_v9 = vpop.permute.xlu1 %1296 }
0x2c3d   :  { %1299 = vst.msk [vmem:[#allocation3] sm:$0x3] %vm99_vm1, %v1297_v9  ;;  %v2457_v11 = vcombine.low %v2451_v7, %v2454_v10 }
0x2c3e   :  { %v1288_v21 = vpop.permute.xlu0 %1287 }
0x2c3f   :  { %1291 = vst.msk [vmem:[#allocation2] sm:$0x3] %vm99_vm1, %v1288_v21  ;;  %2506 = vst.sshfl [vmem:[#allocation15] sm:$0x33 pattern:$0x76325410] %v2457_v11 }
0x2c40   :  { %v2428_v14 = vpop.permute.xlu1 %2427 }
0x2c41   :  { %3162 = shalt.err (!%p3159_p2)
}
0x2c42   :  { %s3163_s22 = scalar_lea.hbm %s3733_s7, 64 }
0x2c43   :  { %p3164_p3 = scmp.ne.s32.totalorder %s3733_s7, %s3163_s22  ;;  %p3167_p4 = scmp.lt.u32.totalorder %s3163_s22, %s3733_s7 }
0x2c45   :  { %p3169_p5 = pnand %p3167_p4, %p3164_p3 }
0x2c47   :  { %3172 = shalt.err (!%p3169_p5)
}
0x2c48   :  { %2476 = dma.vmem_to_hbm [thread:$0]  %s2474_s18, 64, %s3733_s7, [#allocation8]   ;;  %2430 = vst.msk [vmem:[#allocation3 + $0x2] sm:$0x3] %vm99_vm1, %v2428_v14 }
0x2caa   :  { %v2420_v2 = vpop.permute.xlu0 %2419 }
0x2cab   :  { %2422 = vst.msk [vmem:[#allocation2 + $0x2] sm:$0x3] %vm99_vm1, %v2420_v2 }
0x2cac   :  { %3179 = dma.done.wait [#allocation8], 64  }
0x2cad   :  { %3180 = vsyncadd [#allocation8], 4294967232 }
0x2cae   :  { %2480 = vsyncpa [#allocation7], 1 }
0x2caf   :  { %2481 = vsyncpa [#allocation10], 1 }
0x2cb0   :  { %2482 = vsyncpa [#allocation13], 1 }
0x2cb1   :  { %2483 = vsyncpa [#allocation8], 1 }

</bundles_post_ra>
